<compile_context>
chip_gen: v6e
topology: v6e:2x2x1
jax: 0.10.0
libtpu: 0.0.40
codegen_flags: <defaults>
</compile_context>

<pallas_src>
import functools

import jax
import jax.numpy as jnp
from jax.experimental import pallas as pl
from jax.experimental.pallas import tpu as pltpu

EMBED_DIM = 32
NUM_HEADS = 4
HEAD_DIM = EMBED_DIM // NUM_HEADS
FFN_DIM = 64
LN_EPS = 1e-5
NEG_INF = -1e9


# ----------------------------------------------------------------------------
# Fused decoder-layer kernel (one grid step = Bblk batch elements)
# ----------------------------------------------------------------------------
def _decoder_layer_kernel(
    x_ref, enc_ref,
    sa_wqkv_ref, sa_bqkv_ref, sa_wo_ref, sa_bo_ref,
    ca_wqkv_ref, ca_bqkv_ref, ca_wo_ref, ca_bo_ref,
    ln_g_ref, ln_b_ref,
    w1_ref, b1_ref, w2_ref, b2_ref,
    o_ref, attnw_ref=None,
):
    Bblk, T, E = x_ref.shape
    S = enc_ref.shape[1]
    _, H, Dh, _ = sa_wqkv_ref.shape
    G = Bblk * H  # fused (batch, head) leading dim for all attention einsums

    def per_head(w):
        # (H, d0, d1) -> (G, d0, d1): replicate per-head tensor across the batch block.
        return jnp.broadcast_to(w[None], (Bblk,) + w.shape).reshape((G,) + w.shape[1:])

    def mha(xq, ykv, wqkv_ref, bqkv_ref, wo_ref, bo_ref, causal):
        # xq: (Bblk, Tq, E) queries; ykv: (Bblk, Sk, E) keys/values.
        Tq = xq.shape[1]
        Sk = ykv.shape[1]
        # Broadcast tokens across heads so every matmul below is a plain
        # leading-batch einsum (no 8-wide lane slices, no lane concat).
        xq_g = jnp.broadcast_to(xq[:, None], (Bblk, H, Tq, E)).reshape(G, Tq, E)
        y_g = jnp.broadcast_to(ykv[:, None], (Bblk, H, Sk, E)).reshape(G, Sk, E)

        wq = per_head(wqkv_ref[0])   # (G, Dh, E) -- softmax scale pre-folded
        wk = per_head(wqkv_ref[1])
        wv = per_head(wqkv_ref[2])
        bq = per_head(bqkv_ref[0])   # (G, 1, Dh)
        bk = per_head(bqkv_ref[1])
        bv = per_head(bqkv_ref[2])

        q = jnp.einsum("gte,gde->gtd", xq_g, wq, preferred_element_type=jnp.float32) + bq
        k = jnp.einsum("gse,gde->gsd", y_g, wk, preferred_element_type=jnp.float32) + bk
        v = jnp.einsum("gse,gde->gsd", y_g, wv, preferred_element_type=jnp.float32) + bv

        s = jnp.einsum("gtd,gsd->gts", q, k, preferred_element_type=jnp.float32)
        if causal:
            # Build the causal (future) mask in-kernel -- no (T,T) DMA.
            row = jax.lax.broadcasted_iota(jnp.int32, (Tq, Sk), 0)
            col = jax.lax.broadcasted_iota(jnp.int32, (Tq, Sk), 1)
            s = jnp.where((col <= row)[None], s, NEG_INF)
        s = s - jnp.max(s, axis=-1, keepdims=True)
        p = jnp.exp(s)
        p = p * pl.reciprocal(jnp.sum(p, axis=-1, keepdims=True), approx=True)

        ctx = jnp.einsum("gts,gsd->gtd", p, v, preferred_element_type=jnp.float32)
        out = jnp.einsum("gtd,gde->gte", ctx, per_head(wo_ref[...]),
                         preferred_element_type=jnp.float32)
        out = jnp.sum(out.reshape(Bblk, H, Tq, E), axis=1) + bo_ref[...]
        return out, p  # out: (Bblk,Tq,E), p: (G,Tq,Sk)

    def add_ln(x, res, i):
        h = x + res
        mean = jnp.mean(h, axis=-1, keepdims=True)
        c = h - mean
        var = jnp.mean(c * c, axis=-1, keepdims=True)
        return c * jax.lax.rsqrt(var + LN_EPS) * ln_g_ref[i] + ln_b_ref[i]

    x = x_ref[...]      # (Bblk, T, E)
    enc = enc_ref[...]  # (Bblk, S, E)

    # --- self attention (causal) + residual + LayerNorm (post-norm) ---
    res = x
    sa, _ = mha(x, x, sa_wqkv_ref, sa_bqkv_ref, sa_wo_ref, sa_bo_ref, causal=True)
    x = add_ln(sa, res, 0)

    # --- encoder-decoder attention + residual + LayerNorm ---
    res = x
    ca, p = mha(x, enc, ca_wqkv_ref, ca_bqkv_ref, ca_wo_ref, ca_bo_ref, causal=False)
    x = add_ln(ca, res, 1)

    # --- FFN (fc2(relu(fc1(x)))) + residual + LayerNorm ---
    res = x
    w1b = jnp.broadcast_to(w1_ref[...][None], (Bblk,) + w1_ref.shape)
    w2b = jnp.broadcast_to(w2_ref[...][None], (Bblk,) + w2_ref.shape)
    h = jnp.maximum(
        jnp.einsum("bte,bef->btf", x, w1b, preferred_element_type=jnp.float32)
        + b1_ref[...], 0.0)
    f = jnp.einsum("btf,bfe->bte", h, w2b, preferred_element_type=jnp.float32) + b2_ref[...]
    x = add_ln(f, res, 2)

    o_ref[...] = x.astype(o_ref.dtype)
    if attnw_ref is not None:   # only materialized on the need_attn path
        attnw_ref[...] = jnp.mean(p.reshape(Bblk, H, T, S), axis=1).astype(attnw_ref.dtype)


# ----------------------------------------------------------------------------
# pallas_call wrapper
# ----------------------------------------------------------------------------
_WEIGHT_ORDER = ("sa_wqkv", "sa_bqkv", "sa_wo", "sa_bo",
                 "ca_wqkv", "ca_bqkv", "ca_wo", "ca_bo",
                 "ln_g", "ln_b", "w1", "b1", "w2", "b2")


def _resident(shape):
    n = len(shape)
    return pl.BlockSpec(shape, lambda b, _n=n: (0,) * _n)


@functools.partial(jax.jit, static_argnames=("need_attn", "batch_parallel"))
def _layer_impl(x_tbe, enc_sbe, params, *, need_attn, batch_parallel):
    T, B, E = x_tbe.shape
    S = enc_sbe.shape[0]
    x = jnp.transpose(x_tbe, (1, 0, 2))     # (B, T, E)
    enc = jnp.transpose(enc_sbe, (1, 0, 2))  # (B, S, E)

    Bblk = 1 if batch_parallel else B        # 1 per grid step (v7x megacore) or all-at-once
    grid = (B // Bblk,)

    tok_spec = pl.BlockSpec((Bblk, T, E), lambda b: (b, 0, 0))
    enc_spec = pl.BlockSpec((Bblk, S, E), lambda b: (b, 0, 0))
    weights = [params[k] for k in _WEIGHT_ORDER]
    in_specs = [tok_spec, enc_spec] + [_resident(w.shape) for w in weights]

    if need_attn:
        out_specs = (tok_spec, pl.BlockSpec((Bblk, T, S), lambda b: (b, 0, 0)))
        out_shape = (jax.ShapeDtypeStruct((B, T, E), x.dtype),
                     jax.ShapeDtypeStruct((B, T, S), jnp.float32))
    else:
        out_specs = tok_spec
        out_shape = jax.ShapeDtypeStruct((B, T, E), x.dtype)

    result = pl.pallas_call(
        _decoder_layer_kernel,
        grid=grid,
        in_specs=in_specs,
        out_specs=out_specs,
        out_shape=out_shape,
        compiler_params=pltpu.CompilerParams(
            dimension_semantics=("parallel",) if batch_parallel else ("arbitrary",)),
    )(x, enc, *weights)

    if need_attn:
        out, attnw = result
    else:
        out, attnw = result, None
    return jnp.transpose(out, (1, 0, 2)), attnw


def _default_batch_parallel():
    # Megacore (2 TCs/chip) benefits from a parallel batch grid; single-TC chips
    # prefer one collapsed grid step.
    try:
        kind = jax.devices()[0].device_kind.lower()
        return ("v7" in kind) or ("7x" in kind)
    except Exception:  # pragma: no cover
        return False


def transformer_decoder_layer(x_tbe, enc_sbe, params, need_attn=False, batch_parallel=None):
    """Mirrors the PyTorch module's forward: returns (x, attn_or_None, None)."""
    if batch_parallel is None:
        batch_parallel = _default_batch_parallel()
    x, attn = _layer_impl(x_tbe, enc_sbe, params,
                          need_attn=need_attn, batch_parallel=bool(batch_parallel))
    return x, attn, None


# ----------------------------------------------------------------------------
# Parameter init (flat, torch-like (in,out) layout) + packing for the kernel
# ----------------------------------------------------------------------------
def init_params(key):
    E, F = EMBED_DIM, FFN_DIM
    ks = jax.random.split(key, 20)

    def w(k, fi, fo):
        return jax.random.normal(k, (fi, fo), jnp.float32) * 0.05

    def b(k, fo):
        return jax.random.normal(k, (1, fo), jnp.float32) * 0.02

    def attn_params(kw):
        return (w(kw[0], E, E), w(kw[1], E, E), w(kw[2], E, E), w(kw[3], E, E),
                b(kw[4], E), b(kw[5], E), b(kw[6], E), b(kw[7], E))

    return {
        "self_attn": attn_params(ks[0:8]),
        "encoder_attn": attn_params(ks[8:16]),
        "self_attn_ln": (jnp.ones((1, E), jnp.float32), jnp.zeros((1, E), jnp.float32)),
        "encoder_attn_ln": (jnp.ones((1, E), jnp.float32), jnp.zeros((1, E), jnp.float32)),
        "final_ln": (jnp.ones((1, E), jnp.float32), jnp.zeros((1, E), jnp.float32)),
        "ffn": (w(ks[16], E, F), b(ks[17], F), w(ks[18], F, E), b(ks[19], E)),
    }


def prep_params(p):
    """Pack flat (in,out) weights into the head-major layout the kernel wants.

    Runs once, outside the layer forward.  The 1/sqrt(head_dim) softmax scale is
    folded into the Q weights/bias here so the kernel never multiplies by it.
    """
    E, H, Dh = EMBED_DIM, NUM_HEADS, HEAD_DIM
    scale = Dh ** -0.5

    def heads_in(w):   # (E, E) (in,out) -> (H, Dh, E)
        return jnp.transpose(w.reshape(E, H, Dh), (1, 2, 0))

    def heads_bias(b):  # (1, E) -> (H, 1, Dh)
        return b.reshape(H, Dh)[:, None, :]

    def attn(wq, wk, wv, wo, bq, bk, bv, bo):
        wqkv = jnp.stack([heads_in(wq) * scale, heads_in(wk), heads_in(wv)])   # (3,H,Dh,E)
        bqkv = jnp.stack([heads_bias(bq) * scale, heads_bias(bk), heads_bias(bv)])  # (3,H,1,Dh)
        wo_h = wo.reshape(H, Dh, E)                                            # (H,Dh,E)
        return wqkv, bqkv, wo_h, bo

    sa = attn(*p["self_attn"])
    ca = attn(*p["encoder_attn"])
    return {
        "sa_wqkv": sa[0], "sa_bqkv": sa[1], "sa_wo": sa[2], "sa_bo": sa[3],
        "ca_wqkv": ca[0], "ca_bqkv": ca[1], "ca_wo": ca[2], "ca_bo": ca[3],
        "ln_g": jnp.stack([p["self_attn_ln"][0], p["encoder_attn_ln"][0], p["final_ln"][0]]),
        "ln_b": jnp.stack([p["self_attn_ln"][1], p["encoder_attn_ln"][1], p["final_ln"][1]]),
        "w1": p["ffn"][0], "b1": p["ffn"][1], "w2": p["ffn"][2], "b2": p["ffn"][3],
    }


# ----------------------------------------------------------------------------
# Pure-JAX reference (mirrors fairseq math) for a correctness check
# ----------------------------------------------------------------------------
def _ref_mha(x, y, mask, wq, wk, wv, wo, bq, bk, bv, bo):
    B, T, E = x.shape
    S = y.shape[1]
    q = (x @ wq + bq) * (HEAD_DIM ** -0.5)
    k = y @ wk + bk
    v = y @ wv + bv
    q = q.reshape(B, T, NUM_HEADS, HEAD_DIM)
    k = k.reshape(B, S, NUM_HEADS, HEAD_DIM)
    v = v.reshape(B, S, NUM_HEADS, HEAD_DIM)
    s = jnp.einsum("bthd,bshd->bhts", q, k)
    if mask is not None:
        s = s + mask
    p = jax.nn.softmax(s, axis=-1)
    ctx = jnp.einsum("bhts,bshd->bthd", p, v).reshape(B, T, E)
    return ctx @ wo + bo, p.mean(axis=1)


def reference_layer(x_tbe, enc_sbe, p):
    x = jnp.transpose(x_tbe, (1, 0, 2))
    enc = jnp.transpose(enc_sbe, (1, 0, 2))
    T = x.shape[1]
    causal = jnp.where(jnp.triu(jnp.ones((T, T), bool), k=1), NEG_INF, 0.0).astype(jnp.float32)

    def ln(h, g, b):
        mean = h.mean(-1, keepdims=True)
        c = h - mean
        var = (c * c).mean(-1, keepdims=True)
        return c * jax.lax.rsqrt(var + LN_EPS) * g + b

    res = x
    sa, _ = _ref_mha(x, x, causal, *p["self_attn"])
    x = ln(res + sa, *p["self_attn_ln"])

    res = x
    ca, attn_w = _ref_mha(x, enc, None, *p["encoder_attn"])
    x = ln(res + ca, *p["encoder_attn_ln"])

    res = x
    w1, b1, w2, b2 = p["ffn"]
    h = jnp.maximum(x @ w1 + b1, 0.0)
    x = ln(res + (h @ w2 + b2), *p["final_ln"])
    return jnp.transpose(x, (1, 0, 2)), attn_w


# ----------------------------------------------------------------------------
if __name__ == "__main__":
    key = jax.random.PRNGKey(0)
    k_x, k_enc, k_p = jax.random.split(key, 3)

    T, B, S = 8, 2, 8
    x = jax.random.normal(k_x, (T, B, EMBED_DIM), jnp.float32)      # (seq, batch, embed)
    enc = jax.random.normal(k_enc, (S, B, EMBED_DIM), jnp.float32)  # (src, batch, embed)
    flat_params = init_params(k_p)
    params = prep_params(flat_params)

    # Variant 1: need_attn=True (module's eval default), batch-parallel grid (v7x path).
    out, attn_w, _ = transformer_decoder_layer(x, enc, params,
                                               need_attn=True, batch_parallel=True)
    out = jax.block_until_ready(out)
    attn_w = jax.block_until_ready(attn_w)

    # Variant 2: common fast path -- no attention-weight output, collapsed batch grid.
    out_fast, attn_none, _ = transformer_decoder_layer(x, enc, params,
                                                       need_attn=False, batch_parallel=False)
    out_fast = jax.block_until_ready(out_fast)

    ref_out, ref_attn = reference_layer(x, enc, flat_params)

    assert out.shape == (T, B, EMBED_DIM)
    assert attn_w.shape == (B, T, S)
    assert attn_none is None
    assert jnp.allclose(out, ref_out, rtol=2e-2, atol=2e-2), "output mismatch vs reference"
    assert jnp.allclose(out_fast, ref_out, rtol=2e-2, atol=2e-2), "fast-path output mismatch"
    assert jnp.allclose(attn_w, ref_attn, rtol=2e-2, atol=2e-2), "attn-weight mismatch vs reference"

    print("KERNEL_OK")
</pallas_src>

<mosaic_0001>
module attributes {stable_mosaic.version = 11 : i64} {
  func.func @_decoder_layer_kernel(%arg0: i32, %arg1: memref<1x8x32xf32, #tpu.memory_space<vmem>>, %arg2: memref<1x8x32xf32, #tpu.memory_space<vmem>>, %arg3: memref<3x4x8x32xf32, #tpu.memory_space<vmem>>, %arg4: memref<3x4x1x8xf32, #tpu.memory_space<vmem>>, %arg5: memref<4x8x32xf32, #tpu.memory_space<vmem>>, %arg6: memref<1x32xf32, #tpu.memory_space<vmem>>, %arg7: memref<3x4x8x32xf32, #tpu.memory_space<vmem>>, %arg8: memref<3x4x1x8xf32, #tpu.memory_space<vmem>>, %arg9: memref<4x8x32xf32, #tpu.memory_space<vmem>>, %arg10: memref<1x32xf32, #tpu.memory_space<vmem>>, %arg11: memref<3x1x32xf32, #tpu.memory_space<vmem>>, %arg12: memref<3x1x32xf32, #tpu.memory_space<vmem>>, %arg13: memref<32x64xf32, #tpu.memory_space<vmem>>, %arg14: memref<1x64xf32, #tpu.memory_space<vmem>>, %arg15: memref<64x32xf32, #tpu.memory_space<vmem>>, %arg16: memref<1x32xf32, #tpu.memory_space<vmem>>, %arg17: memref<1x8x32xf32, #tpu.memory_space<vmem>>, %arg18: memref<1x8x8xf32, #tpu.memory_space<vmem>>) attributes {dimension_semantics = [#tpu.dimension_semantics<parallel>], iteration_bounds = array<i64: 2>, scalar_prefetch = 0 : i64, scratch_operands = 0 : i64, tpu.core_type = #tpu.core_type<tc>, window_params = [{transform_indices = @transform_0, window_bounds = array<i64: 1, 8, 32>}, {transform_indices = @transform_1, window_bounds = array<i64: 1, 8, 32>}, {pipeline_mode = #tpu.pipeline_mode<synchronous>, transform_indices = @transform_2, window_bounds = array<i64: 3, 4, 8, 32>}, {pipeline_mode = #tpu.pipeline_mode<synchronous>, transform_indices = @transform_3, window_bounds = array<i64: 3, 4, 1, 8>}, {pipeline_mode = #tpu.pipeline_mode<synchronous>, transform_indices = @transform_4, window_bounds = array<i64: 4, 8, 32>}, {pipeline_mode = #tpu.pipeline_mode<synchronous>, transform_indices = @transform_5, window_bounds = array<i64: 1, 32>}, {pipeline_mode = #tpu.pipeline_mode<synchronous>, transform_indices = @transform_6, window_bounds = array<i64: 3, 4, 8, 32>}, {pipeline_mode = #tpu.pipeline_mode<synchronous>, transform_indices = @transform_7, window_bounds = array<i64: 3, 4, 1, 8>}, {pipeline_mode = #tpu.pipeline_mode<synchronous>, transform_indices = @transform_8, window_bounds = array<i64: 4, 8, 32>}, {pipeline_mode = #tpu.pipeline_mode<synchronous>, transform_indices = @transform_9, window_bounds = array<i64: 1, 32>}, {pipeline_mode = #tpu.pipeline_mode<synchronous>, transform_indices = @transform_10, window_bounds = array<i64: 3, 1, 32>}, {pipeline_mode = #tpu.pipeline_mode<synchronous>, transform_indices = @transform_11, window_bounds = array<i64: 3, 1, 32>}, {pipeline_mode = #tpu.pipeline_mode<synchronous>, transform_indices = @transform_12, window_bounds = array<i64: 32, 64>}, {pipeline_mode = #tpu.pipeline_mode<synchronous>, transform_indices = @transform_13, window_bounds = array<i64: 1, 64>}, {pipeline_mode = #tpu.pipeline_mode<synchronous>, transform_indices = @transform_14, window_bounds = array<i64: 64, 32>}, {pipeline_mode = #tpu.pipeline_mode<synchronous>, transform_indices = @transform_15, window_bounds = array<i64: 1, 32>}, {transform_indices = @transform_16, window_bounds = array<i64: 1, 8, 32>}, {transform_indices = @transform_17, window_bounds = array<i64: 1, 8, 8>}]} {
    %c0 = arith.constant 0 : index
    %c0_0 = arith.constant 0 : index
    %c0_1 = arith.constant 0 : index
    %0 = vector.load %arg1[%c0, %c0_0, %c0_1] : memref<1x8x32xf32, #tpu.memory_space<vmem>>, vector<1x8x32xf32>
    %c0_2 = arith.constant 0 : index
    %c0_3 = arith.constant 0 : index
    %c0_4 = arith.constant 0 : index
    %1 = vector.load %arg2[%c0_2, %c0_3, %c0_4] : memref<1x8x32xf32, #tpu.memory_space<vmem>>, vector<1x8x32xf32>
    %2 = vector.shape_cast %0 : vector<1x8x32xf32> to vector<1x1x8x32xf32>
    %3 = vector.shape_cast %2 : vector<1x1x8x32xf32> to vector<1x1x8x32xf32>
    %4 = vector.broadcast %3 : vector<1x1x8x32xf32> to vector<1x4x8x32xf32>
    %5 = vector.shape_cast %4 : vector<1x4x8x32xf32> to vector<4x8x32xf32>
    %6 = vector.shape_cast %0 : vector<1x8x32xf32> to vector<1x1x8x32xf32>
    %7 = vector.shape_cast %6 : vector<1x1x8x32xf32> to vector<1x1x8x32xf32>
    %8 = vector.broadcast %7 : vector<1x1x8x32xf32> to vector<1x4x8x32xf32>
    %9 = vector.shape_cast %8 : vector<1x4x8x32xf32> to vector<4x8x32xf32>
    %c0_5 = arith.constant 0 : index
    %c0_6 = arith.constant 0 : index
    %c0_7 = arith.constant 0 : index
    %c0_8 = arith.constant 0 : index
    %10 = vector.load %arg3[%c0_5, %c0_6, %c0_7, %c0_8] : memref<3x4x8x32xf32, #tpu.memory_space<vmem>>, vector<1x4x8x32xf32>
    %11 = vector.shape_cast %10 : vector<1x4x8x32xf32> to vector<4x8x32xf32>
    %12 = vector.shape_cast %11 : vector<4x8x32xf32> to vector<1x4x8x32xf32>
    %13 = vector.shape_cast %12 : vector<1x4x8x32xf32> to vector<4x8x32xf32>
    %c1 = arith.constant 1 : index
    %c0_9 = arith.constant 0 : index
    %c0_10 = arith.constant 0 : index
    %c0_11 = arith.constant 0 : index
    %14 = vector.load %arg3[%c1, %c0_9, %c0_10, %c0_11] : memref<3x4x8x32xf32, #tpu.memory_space<vmem>>, vector<1x4x8x32xf32>
    %15 = vector.shape_cast %14 : vector<1x4x8x32xf32> to vector<4x8x32xf32>
    %16 = vector.shape_cast %15 : vector<4x8x32xf32> to vector<1x4x8x32xf32>
    %17 = vector.shape_cast %16 : vector<1x4x8x32xf32> to vector<4x8x32xf32>
    %c2 = arith.constant 2 : index
    %c0_12 = arith.constant 0 : index
    %c0_13 = arith.constant 0 : index
    %c0_14 = arith.constant 0 : index
    %18 = vector.load %arg3[%c2, %c0_12, %c0_13, %c0_14] : memref<3x4x8x32xf32, #tpu.memory_space<vmem>>, vector<1x4x8x32xf32>
    %19 = vector.shape_cast %18 : vector<1x4x8x32xf32> to vector<4x8x32xf32>
    %20 = vector.shape_cast %19 : vector<4x8x32xf32> to vector<1x4x8x32xf32>
    %21 = vector.shape_cast %20 : vector<1x4x8x32xf32> to vector<4x8x32xf32>
    %c0_15 = arith.constant 0 : index
    %c0_16 = arith.constant 0 : index
    %c0_17 = arith.constant 0 : index
    %c0_18 = arith.constant 0 : index
    %22 = vector.load %arg4[%c0_15, %c0_16, %c0_17, %c0_18] : memref<3x4x1x8xf32, #tpu.memory_space<vmem>>, vector<1x4x1x8xf32>
    %23 = vector.shape_cast %22 : vector<1x4x1x8xf32> to vector<4x1x8xf32>
    %24 = vector.shape_cast %23 : vector<4x1x8xf32> to vector<1x4x1x8xf32>
    %25 = vector.shape_cast %24 : vector<1x4x1x8xf32> to vector<4x1x8xf32>
    %c1_19 = arith.constant 1 : index
    %c0_20 = arith.constant 0 : index
    %c0_21 = arith.constant 0 : index
    %c0_22 = arith.constant 0 : index
    %26 = vector.load %arg4[%c1_19, %c0_20, %c0_21, %c0_22] : memref<3x4x1x8xf32, #tpu.memory_space<vmem>>, vector<1x4x1x8xf32>
    %27 = vector.shape_cast %26 : vector<1x4x1x8xf32> to vector<4x1x8xf32>
    %28 = vector.shape_cast %27 : vector<4x1x8xf32> to vector<1x4x1x8xf32>
    %29 = vector.shape_cast %28 : vector<1x4x1x8xf32> to vector<4x1x8xf32>
    %c2_23 = arith.constant 2 : index
    %c0_24 = arith.constant 0 : index
    %c0_25 = arith.constant 0 : index
    %c0_26 = arith.constant 0 : index
    %30 = vector.load %arg4[%c2_23, %c0_24, %c0_25, %c0_26] : memref<3x4x1x8xf32, #tpu.memory_space<vmem>>, vector<1x4x1x8xf32>
    %31 = vector.shape_cast %30 : vector<1x4x1x8xf32> to vector<4x1x8xf32>
    %32 = vector.shape_cast %31 : vector<4x1x8xf32> to vector<1x4x1x8xf32>
    %33 = vector.shape_cast %32 : vector<1x4x1x8xf32> to vector<4x1x8xf32>
    "tpu.trace_start"() <{level = 10 : i32, message = "gte,gde->gtd"}> : () -> ()
    %cst = arith.constant dense<0.000000e+00> : vector<4x8x8xf32>
    %34 = tpu.matmul %5, %13, %cst {dimension_numbers = #tpu.dot_dimension_numbers<[2], [2], [1], [1], [0, 0, 0, 1, 1, 1], [0], [0]>} : vector<4x8x32xf32>, vector<4x8x32xf32>, vector<4x8x8xf32> -> vector<4x8x8xf32>
    "tpu.trace_stop"() : () -> ()
    %35 = vector.broadcast %25 : vector<4x1x8xf32> to vector<4x8x8xf32>
    %36 = arith.addf %34, %35 : vector<4x8x8xf32>
    "tpu.trace_start"() <{level = 10 : i32, message = "gse,gde->gsd"}> : () -> ()
    %cst_27 = arith.constant dense<0.000000e+00> : vector<4x8x8xf32>
    %37 = tpu.matmul %9, %17, %cst_27 {dimension_numbers = #tpu.dot_dimension_numbers<[2], [2], [1], [1], [0, 0, 0, 1, 1, 1], [0], [0]>} : vector<4x8x32xf32>, vector<4x8x32xf32>, vector<4x8x8xf32> -> vector<4x8x8xf32>
    "tpu.trace_stop"() : () -> ()
    %38 = vector.broadcast %29 : vector<4x1x8xf32> to vector<4x8x8xf32>
    %39 = arith.addf %37, %38 : vector<4x8x8xf32>
    "tpu.trace_start"() <{level = 10 : i32, message = "gse,gde->gsd"}> : () -> ()
    %cst_28 = arith.constant dense<0.000000e+00> : vector<4x8x8xf32>
    %40 = tpu.matmul %9, %21, %cst_28 {dimension_numbers = #tpu.dot_dimension_numbers<[2], [2], [1], [1], [0, 0, 0, 1, 1, 1], [0], [0]>} : vector<4x8x32xf32>, vector<4x8x32xf32>, vector<4x8x8xf32> -> vector<4x8x8xf32>
    "tpu.trace_stop"() : () -> ()
    %41 = vector.broadcast %33 : vector<4x1x8xf32> to vector<4x8x8xf32>
    %42 = arith.addf %40, %41 : vector<4x8x8xf32>
    "tpu.trace_start"() <{level = 10 : i32, message = "gtd,gsd->gts"}> : () -> ()
    %cst_29 = arith.constant dense<0.000000e+00> : vector<4x8x8xf32>
    %43 = tpu.matmul %36, %39, %cst_29 {dimension_numbers = #tpu.dot_dimension_numbers<[2], [2], [1], [1], [0, 0, 0, 1, 1, 1], [0], [0]>} : vector<4x8x8xf32>, vector<4x8x8xf32>, vector<4x8x8xf32> -> vector<4x8x8xf32>
    "tpu.trace_stop"() : () -> ()
    %44 = tpu.iota {dimensions = array<i32: 0>} : vector<8x8xi32>
    %45 = tpu.iota {dimensions = array<i32: 1>} : vector<8x8xi32>
    %46 = arith.cmpi sle, %45, %44 : vector<8x8xi32>
    %47 = vector.shape_cast %46 : vector<8x8xi1> to vector<1x8x8xi1>
    %cst_30 = arith.constant -1.000000e+09 : f32
    %48 = vector.shape_cast %47 : vector<1x8x8xi1> to vector<1x8x8xi1>
    %49 = vector.broadcast %48 : vector<1x8x8xi1> to vector<4x8x8xi1>
    %50 = vector.broadcast %cst_30 : f32 to vector<4x8x8xf32>
    %51 = arith.select %49, %43, %50 : vector<4x8x8xi1>, vector<4x8x8xf32>
    %cst_31 = arith.constant dense<0xFF800000> : vector<4x8xf32>
    %52 = vector.multi_reduction <maximumf>, %51, %cst_31 [2] : vector<4x8x8xf32> to vector<4x8xf32>
    %53 = vector.shape_cast %52 : vector<4x8xf32> to vector<4x8x1xf32>
    %54 = vector.broadcast %53 : vector<4x8x1xf32> to vector<4x8x8xf32>
    %55 = arith.subf %51, %54 : vector<4x8x8xf32>
    %56 = math.exp %55 : vector<4x8x8xf32>
    %cst_32 = arith.constant dense<0.000000e+00> : vector<4x8xf32>
    %57 = vector.multi_reduction <add>, %56, %cst_32 [2] : vector<4x8x8xf32> to vector<4x8xf32>
    %58 = vector.shape_cast %57 : vector<4x8xf32> to vector<4x8x1xf32>
    %59 = tpu.reciprocal %58 {approx = true} : vector<4x8x1xf32> -> vector<4x8x1xf32>
    %60 = vector.broadcast %59 : vector<4x8x1xf32> to vector<4x8x8xf32>
    %61 = arith.mulf %56, %60 : vector<4x8x8xf32>
    "tpu.trace_start"() <{level = 10 : i32, message = "gts,gsd->gtd"}> : () -> ()
    %cst_33 = arith.constant dense<0.000000e+00> : vector<4x8x8xf32>
    %62 = tpu.matmul %61, %42, %cst_33 {dimension_numbers = #tpu.dot_dimension_numbers<[2], [1], [1], [2], [0, 0, 0, 1, 1, 2], [0], [0]>} : vector<4x8x8xf32>, vector<4x8x8xf32>, vector<4x8x8xf32> -> vector<4x8x8xf32>
    "tpu.trace_stop"() : () -> ()
    %c0_34 = arith.constant 0 : index
    %c0_35 = arith.constant 0 : index
    %c0_36 = arith.constant 0 : index
    %63 = vector.load %arg5[%c0_34, %c0_35, %c0_36] : memref<4x8x32xf32, #tpu.memory_space<vmem>>, vector<4x8x32xf32>
    %64 = vector.shape_cast %63 : vector<4x8x32xf32> to vector<1x4x8x32xf32>
    %65 = vector.shape_cast %64 : vector<1x4x8x32xf32> to vector<4x8x32xf32>
    "tpu.trace_start"() <{level = 10 : i32, message = "gtd,gde->gte"}> : () -> ()
    %cst_37 = arith.constant dense<0.000000e+00> : vector<4x8x32xf32>
    %66 = tpu.matmul %62, %65, %cst_37 {dimension_numbers = #tpu.dot_dimension_numbers<[2], [1], [1], [2], [0, 0, 0, 1, 1, 2], [0], [0]>} : vector<4x8x8xf32>, vector<4x8x32xf32>, vector<4x8x32xf32> -> vector<4x8x32xf32>
    "tpu.trace_stop"() : () -> ()
    %67 = vector.shape_cast %66 : vector<4x8x32xf32> to vector<1x4x8x32xf32>
    %cst_38 = arith.constant dense<0.000000e+00> : vector<1x8x32xf32>
    %68 = vector.multi_reduction <add>, %67, %cst_38 [1] : vector<1x4x8x32xf32> to vector<1x8x32xf32>
    %c0_39 = arith.constant 0 : index
    %c0_40 = arith.constant 0 : index
    %69 = vector.load %arg6[%c0_39, %c0_40] : memref<1x32xf32, #tpu.memory_space<vmem>>, vector<1x32xf32>
    %70 = vector.shape_cast %69 : vector<1x32xf32> to vector<1x1x32xf32>
    %71 = vector.broadcast %70 : vector<1x1x32xf32> to vector<1x8x32xf32>
    %72 = arith.addf %68, %71 : vector<1x8x32xf32>
    %73 = arith.addf %72, %0 : vector<1x8x32xf32>
    %cst_41 = arith.constant dense<0.000000e+00> : vector<1x8xf32>
    %74 = vector.multi_reduction <add>, %73, %cst_41 [2] : vector<1x8x32xf32> to vector<1x8xf32>
    %75 = vector.shape_cast %74 : vector<1x8xf32> to vector<1x8x1xf32>
    %cst_42 = arith.constant 3.200000e+01 : f32
    %76 = vector.broadcast %cst_42 : f32 to vector<1x8x1xf32>
    %77 = arith.divf %75, %76 : vector<1x8x1xf32>
    %78 = vector.broadcast %77 : vector<1x8x1xf32> to vector<1x8x32xf32>
    %79 = arith.subf %73, %78 : vector<1x8x32xf32>
    %80 = arith.mulf %79, %79 : vector<1x8x32xf32>
    %cst_43 = arith.constant dense<0.000000e+00> : vector<1x8xf32>
    %81 = vector.multi_reduction <add>, %80, %cst_43 [2] : vector<1x8x32xf32> to vector<1x8xf32>
    %82 = vector.shape_cast %81 : vector<1x8xf32> to vector<1x8x1xf32>
    %cst_44 = arith.constant 3.200000e+01 : f32
    %83 = vector.broadcast %cst_44 : f32 to vector<1x8x1xf32>
    %84 = arith.divf %82, %83 : vector<1x8x1xf32>
    %cst_45 = arith.constant 9.99999974E-6 : f32
    %85 = vector.broadcast %cst_45 : f32 to vector<1x8x1xf32>
    %86 = arith.addf %84, %85 : vector<1x8x1xf32>
    %87 = math.rsqrt %86 : vector<1x8x1xf32>
    %88 = vector.broadcast %87 : vector<1x8x1xf32> to vector<1x8x32xf32>
    %89 = arith.mulf %79, %88 : vector<1x8x32xf32>
    %c0_46 = arith.constant 0 : index
    %c0_47 = arith.constant 0 : index
    %c0_48 = arith.constant 0 : index
    %90 = vector.load %arg11[%c0_46, %c0_47, %c0_48] : memref<3x1x32xf32, #tpu.memory_space<vmem>>, vector<1x1x32xf32>
    %91 = vector.shape_cast %90 : vector<1x1x32xf32> to vector<1x32xf32>
    %92 = vector.shape_cast %91 : vector<1x32xf32> to vector<1x1x32xf32>
    %93 = vector.broadcast %92 : vector<1x1x32xf32> to vector<1x8x32xf32>
    %94 = arith.mulf %89, %93 : vector<1x8x32xf32>
    %c0_49 = arith.constant 0 : index
    %c0_50 = arith.constant 0 : index
    %c0_51 = arith.constant 0 : index
    %95 = vector.load %arg12[%c0_49, %c0_50, %c0_51] : memref<3x1x32xf32, #tpu.memory_space<vmem>>, vector<1x1x32xf32>
    %96 = vector.shape_cast %95 : vector<1x1x32xf32> to vector<1x32xf32>
    %97 = vector.shape_cast %96 : vector<1x32xf32> to vector<1x1x32xf32>
    %98 = vector.broadcast %97 : vector<1x1x32xf32> to vector<1x8x32xf32>
    %99 = arith.addf %94, %98 : vector<1x8x32xf32>
    %100 = vector.shape_cast %99 : vector<1x8x32xf32> to vector<1x1x8x32xf32>
    %101 = vector.shape_cast %100 : vector<1x1x8x32xf32> to vector<1x1x8x32xf32>
    %102 = vector.broadcast %101 : vector<1x1x8x32xf32> to vector<1x4x8x32xf32>
    %103 = vector.shape_cast %102 : vector<1x4x8x32xf32> to vector<4x8x32xf32>
    %104 = vector.shape_cast %1 : vector<1x8x32xf32> to vector<1x1x8x32xf32>
    %105 = vector.shape_cast %104 : vector<1x1x8x32xf32> to vector<1x1x8x32xf32>
    %106 = vector.broadcast %105 : vector<1x1x8x32xf32> to vector<1x4x8x32xf32>
    %107 = vector.shape_cast %106 : vector<1x4x8x32xf32> to vector<4x8x32xf32>
    %c0_52 = arith.constant 0 : index
    %c0_53 = arith.constant 0 : index
    %c0_54 = arith.constant 0 : index
    %c0_55 = arith.constant 0 : index
    %108 = vector.load %arg7[%c0_52, %c0_53, %c0_54, %c0_55] : memref<3x4x8x32xf32, #tpu.memory_space<vmem>>, vector<1x4x8x32xf32>
    %109 = vector.shape_cast %108 : vector<1x4x8x32xf32> to vector<4x8x32xf32>
    %110 = vector.shape_cast %109 : vector<4x8x32xf32> to vector<1x4x8x32xf32>
    %111 = vector.shape_cast %110 : vector<1x4x8x32xf32> to vector<4x8x32xf32>
    %c1_56 = arith.constant 1 : index
    %c0_57 = arith.constant 0 : index
    %c0_58 = arith.constant 0 : index
    %c0_59 = arith.constant 0 : index
    %112 = vector.load %arg7[%c1_56, %c0_57, %c0_58, %c0_59] : memref<3x4x8x32xf32, #tpu.memory_space<vmem>>, vector<1x4x8x32xf32>
    %113 = vector.shape_cast %112 : vector<1x4x8x32xf32> to vector<4x8x32xf32>
    %114 = vector.shape_cast %113 : vector<4x8x32xf32> to vector<1x4x8x32xf32>
    %115 = vector.shape_cast %114 : vector<1x4x8x32xf32> to vector<4x8x32xf32>
    %c2_60 = arith.constant 2 : index
    %c0_61 = arith.constant 0 : index
    %c0_62 = arith.constant 0 : index
    %c0_63 = arith.constant 0 : index
    %116 = vector.load %arg7[%c2_60, %c0_61, %c0_62, %c0_63] : memref<3x4x8x32xf32, #tpu.memory_space<vmem>>, vector<1x4x8x32xf32>
    %117 = vector.shape_cast %116 : vector<1x4x8x32xf32> to vector<4x8x32xf32>
    %118 = vector.shape_cast %117 : vector<4x8x32xf32> to vector<1x4x8x32xf32>
    %119 = vector.shape_cast %118 : vector<1x4x8x32xf32> to vector<4x8x32xf32>
    %c0_64 = arith.constant 0 : index
    %c0_65 = arith.constant 0 : index
    %c0_66 = arith.constant 0 : index
    %c0_67 = arith.constant 0 : index
    %120 = vector.load %arg8[%c0_64, %c0_65, %c0_66, %c0_67] : memref<3x4x1x8xf32, #tpu.memory_space<vmem>>, vector<1x4x1x8xf32>
    %121 = vector.shape_cast %120 : vector<1x4x1x8xf32> to vector<4x1x8xf32>
    %122 = vector.shape_cast %121 : vector<4x1x8xf32> to vector<1x4x1x8xf32>
    %123 = vector.shape_cast %122 : vector<1x4x1x8xf32> to vector<4x1x8xf32>
    %c1_68 = arith.constant 1 : index
    %c0_69 = arith.constant 0 : index
    %c0_70 = arith.constant 0 : index
    %c0_71 = arith.constant 0 : index
    %124 = vector.load %arg8[%c1_68, %c0_69, %c0_70, %c0_71] : memref<3x4x1x8xf32, #tpu.memory_space<vmem>>, vector<1x4x1x8xf32>
    %125 = vector.shape_cast %124 : vector<1x4x1x8xf32> to vector<4x1x8xf32>
    %126 = vector.shape_cast %125 : vector<4x1x8xf32> to vector<1x4x1x8xf32>
    %127 = vector.shape_cast %126 : vector<1x4x1x8xf32> to vector<4x1x8xf32>
    %c2_72 = arith.constant 2 : index
    %c0_73 = arith.constant 0 : index
    %c0_74 = arith.constant 0 : index
    %c0_75 = arith.constant 0 : index
    %128 = vector.load %arg8[%c2_72, %c0_73, %c0_74, %c0_75] : memref<3x4x1x8xf32, #tpu.memory_space<vmem>>, vector<1x4x1x8xf32>
    %129 = vector.shape_cast %128 : vector<1x4x1x8xf32> to vector<4x1x8xf32>
    %130 = vector.shape_cast %129 : vector<4x1x8xf32> to vector<1x4x1x8xf32>
    %131 = vector.shape_cast %130 : vector<1x4x1x8xf32> to vector<4x1x8xf32>
    "tpu.trace_start"() <{level = 10 : i32, message = "gte,gde->gtd"}> : () -> ()
    %cst_76 = arith.constant dense<0.000000e+00> : vector<4x8x8xf32>
    %132 = tpu.matmul %103, %111, %cst_76 {dimension_numbers = #tpu.dot_dimension_numbers<[2], [2], [1], [1], [0, 0, 0, 1, 1, 1], [0], [0]>} : vector<4x8x32xf32>, vector<4x8x32xf32>, vector<4x8x8xf32> -> vector<4x8x8xf32>
    "tpu.trace_stop"() : () -> ()
    %133 = vector.broadcast %123 : vector<4x1x8xf32> to vector<4x8x8xf32>
    %134 = arith.addf %132, %133 : vector<4x8x8xf32>
    "tpu.trace_start"() <{level = 10 : i32, message = "gse,gde->gsd"}> : () -> ()
    %cst_77 = arith.constant dense<0.000000e+00> : vector<4x8x8xf32>
    %135 = tpu.matmul %107, %115, %cst_77 {dimension_numbers = #tpu.dot_dimension_numbers<[2], [2], [1], [1], [0, 0, 0, 1, 1, 1], [0], [0]>} : vector<4x8x32xf32>, vector<4x8x32xf32>, vector<4x8x8xf32> -> vector<4x8x8xf32>
    "tpu.trace_stop"() : () -> ()
    %136 = vector.broadcast %127 : vector<4x1x8xf32> to vector<4x8x8xf32>
    %137 = arith.addf %135, %136 : vector<4x8x8xf32>
    "tpu.trace_start"() <{level = 10 : i32, message = "gse,gde->gsd"}> : () -> ()
    %cst_78 = arith.constant dense<0.000000e+00> : vector<4x8x8xf32>
    %138 = tpu.matmul %107, %119, %cst_78 {dimension_numbers = #tpu.dot_dimension_numbers<[2], [2], [1], [1], [0, 0, 0, 1, 1, 1], [0], [0]>} : vector<4x8x32xf32>, vector<4x8x32xf32>, vector<4x8x8xf32> -> vector<4x8x8xf32>
    "tpu.trace_stop"() : () -> ()
    %139 = vector.broadcast %131 : vector<4x1x8xf32> to vector<4x8x8xf32>
    %140 = arith.addf %138, %139 : vector<4x8x8xf32>
    "tpu.trace_start"() <{level = 10 : i32, message = "gtd,gsd->gts"}> : () -> ()
    %cst_79 = arith.constant dense<0.000000e+00> : vector<4x8x8xf32>
    %141 = tpu.matmul %134, %137, %cst_79 {dimension_numbers = #tpu.dot_dimension_numbers<[2], [2], [1], [1], [0, 0, 0, 1, 1, 1], [0], [0]>} : vector<4x8x8xf32>, vector<4x8x8xf32>, vector<4x8x8xf32> -> vector<4x8x8xf32>
    "tpu.trace_stop"() : () -> ()
    %cst_80 = arith.constant dense<0xFF800000> : vector<4x8xf32>
    %142 = vector.multi_reduction <maximumf>, %141, %cst_80 [2] : vector<4x8x8xf32> to vector<4x8xf32>
    %143 = vector.shape_cast %142 : vector<4x8xf32> to vector<4x8x1xf32>
    %144 = vector.broadcast %143 : vector<4x8x1xf32> to vector<4x8x8xf32>
    %145 = arith.subf %141, %144 : vector<4x8x8xf32>
    %146 = math.exp %145 : vector<4x8x8xf32>
    %cst_81 = arith.constant dense<0.000000e+00> : vector<4x8xf32>
    %147 = vector.multi_reduction <add>, %146, %cst_81 [2] : vector<4x8x8xf32> to vector<4x8xf32>
    %148 = vector.shape_cast %147 : vector<4x8xf32> to vector<4x8x1xf32>
    %149 = tpu.reciprocal %148 {approx = true} : vector<4x8x1xf32> -> vector<4x8x1xf32>
    %150 = vector.broadcast %149 : vector<4x8x1xf32> to vector<4x8x8xf32>
    %151 = arith.mulf %146, %150 : vector<4x8x8xf32>
    "tpu.trace_start"() <{level = 10 : i32, message = "gts,gsd->gtd"}> : () -> ()
    %cst_82 = arith.constant dense<0.000000e+00> : vector<4x8x8xf32>
    %152 = tpu.matmul %151, %140, %cst_82 {dimension_numbers = #tpu.dot_dimension_numbers<[2], [1], [1], [2], [0, 0, 0, 1, 1, 2], [0], [0]>} : vector<4x8x8xf32>, vector<4x8x8xf32>, vector<4x8x8xf32> -> vector<4x8x8xf32>
    "tpu.trace_stop"() : () -> ()
    %c0_83 = arith.constant 0 : index
    %c0_84 = arith.constant 0 : index
    %c0_85 = arith.constant 0 : index
    %153 = vector.load %arg9[%c0_83, %c0_84, %c0_85] : memref<4x8x32xf32, #tpu.memory_space<vmem>>, vector<4x8x32xf32>
    %154 = vector.shape_cast %153 : vector<4x8x32xf32> to vector<1x4x8x32xf32>
    %155 = vector.shape_cast %154 : vector<1x4x8x32xf32> to vector<4x8x32xf32>
    "tpu.trace_start"() <{level = 10 : i32, message = "gtd,gde->gte"}> : () -> ()
    %cst_86 = arith.constant dense<0.000000e+00> : vector<4x8x32xf32>
    %156 = tpu.matmul %152, %155, %cst_86 {dimension_numbers = #tpu.dot_dimension_numbers<[2], [1], [1], [2], [0, 0, 0, 1, 1, 2], [0], [0]>} : vector<4x8x8xf32>, vector<4x8x32xf32>, vector<4x8x32xf32> -> vector<4x8x32xf32>
    "tpu.trace_stop"() : () -> ()
    %157 = vector.shape_cast %156 : vector<4x8x32xf32> to vector<1x4x8x32xf32>
    %cst_87 = arith.constant dense<0.000000e+00> : vector<1x8x32xf32>
    %158 = vector.multi_reduction <add>, %157, %cst_87 [1] : vector<1x4x8x32xf32> to vector<1x8x32xf32>
    %c0_88 = arith.constant 0 : index
    %c0_89 = arith.constant 0 : index
    %159 = vector.load %arg10[%c0_88, %c0_89] : memref<1x32xf32, #tpu.memory_space<vmem>>, vector<1x32xf32>
    %160 = vector.shape_cast %159 : vector<1x32xf32> to vector<1x1x32xf32>
    %161 = vector.broadcast %160 : vector<1x1x32xf32> to vector<1x8x32xf32>
    %162 = arith.addf %158, %161 : vector<1x8x32xf32>
    %163 = arith.addf %162, %99 : vector<1x8x32xf32>
    %cst_90 = arith.constant dense<0.000000e+00> : vector<1x8xf32>
    %164 = vector.multi_reduction <add>, %163, %cst_90 [2] : vector<1x8x32xf32> to vector<1x8xf32>
    %165 = vector.shape_cast %164 : vector<1x8xf32> to vector<1x8x1xf32>
    %cst_91 = arith.constant 3.200000e+01 : f32
    %166 = vector.broadcast %cst_91 : f32 to vector<1x8x1xf32>
    %167 = arith.divf %165, %166 : vector<1x8x1xf32>
    %168 = vector.broadcast %167 : vector<1x8x1xf32> to vector<1x8x32xf32>
    %169 = arith.subf %163, %168 : vector<1x8x32xf32>
    %170 = arith.mulf %169, %169 : vector<1x8x32xf32>
    %cst_92 = arith.constant dense<0.000000e+00> : vector<1x8xf32>
    %171 = vector.multi_reduction <add>, %170, %cst_92 [2] : vector<1x8x32xf32> to vector<1x8xf32>
    %172 = vector.shape_cast %171 : vector<1x8xf32> to vector<1x8x1xf32>
    %cst_93 = arith.constant 3.200000e+01 : f32
    %173 = vector.broadcast %cst_93 : f32 to vector<1x8x1xf32>
    %174 = arith.divf %172, %173 : vector<1x8x1xf32>
    %cst_94 = arith.constant 9.99999974E-6 : f32
    %175 = vector.broadcast %cst_94 : f32 to vector<1x8x1xf32>
    %176 = arith.addf %174, %175 : vector<1x8x1xf32>
    %177 = math.rsqrt %176 : vector<1x8x1xf32>
    %178 = vector.broadcast %177 : vector<1x8x1xf32> to vector<1x8x32xf32>
    %179 = arith.mulf %169, %178 : vector<1x8x32xf32>
    %c1_95 = arith.constant 1 : index
    %c0_96 = arith.constant 0 : index
    %c0_97 = arith.constant 0 : index
    %180 = vector.load %arg11[%c1_95, %c0_96, %c0_97] : memref<3x1x32xf32, #tpu.memory_space<vmem>>, vector<1x1x32xf32>
    %181 = vector.shape_cast %180 : vector<1x1x32xf32> to vector<1x32xf32>
    %182 = vector.shape_cast %181 : vector<1x32xf32> to vector<1x1x32xf32>
    %183 = vector.broadcast %182 : vector<1x1x32xf32> to vector<1x8x32xf32>
    %184 = arith.mulf %179, %183 : vector<1x8x32xf32>
    %c1_98 = arith.constant 1 : index
    %c0_99 = arith.constant 0 : index
    %c0_100 = arith.constant 0 : index
    %185 = vector.load %arg12[%c1_98, %c0_99, %c0_100] : memref<3x1x32xf32, #tpu.memory_space<vmem>>, vector<1x1x32xf32>
    %186 = vector.shape_cast %185 : vector<1x1x32xf32> to vector<1x32xf32>
    %187 = vector.shape_cast %186 : vector<1x32xf32> to vector<1x1x32xf32>
    %188 = vector.broadcast %187 : vector<1x1x32xf32> to vector<1x8x32xf32>
    %189 = arith.addf %184, %188 : vector<1x8x32xf32>
    %c0_101 = arith.constant 0 : index
    %c0_102 = arith.constant 0 : index
    %190 = vector.load %arg13[%c0_101, %c0_102] : memref<32x64xf32, #tpu.memory_space<vmem>>, vector<32x64xf32>
    %191 = vector.shape_cast %190 : vector<32x64xf32> to vector<1x32x64xf32>
    %c0_103 = arith.constant 0 : index
    %c0_104 = arith.constant 0 : index
    %192 = vector.load %arg15[%c0_103, %c0_104] : memref<64x32xf32, #tpu.memory_space<vmem>>, vector<64x32xf32>
    %193 = vector.shape_cast %192 : vector<64x32xf32> to vector<1x64x32xf32>
    "tpu.trace_start"() <{level = 10 : i32, message = "bte,bef->btf"}> : () -> ()
    %cst_105 = arith.constant dense<0.000000e+00> : vector<1x8x64xf32>
    %194 = tpu.matmul %189, %191, %cst_105 {dimension_numbers = #tpu.dot_dimension_numbers<[2], [1], [1], [2], [0, 0, 0, 1, 1, 2], [0], [0]>} : vector<1x8x32xf32>, vector<1x32x64xf32>, vector<1x8x64xf32> -> vector<1x8x64xf32>
    "tpu.trace_stop"() : () -> ()
    %c0_106 = arith.constant 0 : index
    %c0_107 = arith.constant 0 : index
    %195 = vector.load %arg14[%c0_106, %c0_107] : memref<1x64xf32, #tpu.memory_space<vmem>>, vector<1x64xf32>
    %196 = vector.shape_cast %195 : vector<1x64xf32> to vector<1x1x64xf32>
    %197 = vector.broadcast %196 : vector<1x1x64xf32> to vector<1x8x64xf32>
    %198 = arith.addf %194, %197 : vector<1x8x64xf32>
    %cst_108 = arith.constant 0.000000e+00 : f32
    %199 = vector.broadcast %cst_108 : f32 to vector<1x8x64xf32>
    %200 = arith.maximumf %198, %199 : vector<1x8x64xf32>
    "tpu.trace_start"() <{level = 10 : i32, message = "btf,bfe->bte"}> : () -> ()
    %cst_109 = arith.constant dense<0.000000e+00> : vector<1x8x32xf32>
    %201 = tpu.matmul %200, %193, %cst_109 {dimension_numbers = #tpu.dot_dimension_numbers<[2], [1], [1], [2], [0, 0, 0, 1, 1, 2], [0], [0]>} : vector<1x8x64xf32>, vector<1x64x32xf32>, vector<1x8x32xf32> -> vector<1x8x32xf32>
    "tpu.trace_stop"() : () -> ()
    %c0_110 = arith.constant 0 : index
    %c0_111 = arith.constant 0 : index
    %202 = vector.load %arg16[%c0_110, %c0_111] : memref<1x32xf32, #tpu.memory_space<vmem>>, vector<1x32xf32>
    %203 = vector.shape_cast %202 : vector<1x32xf32> to vector<1x1x32xf32>
    %204 = vector.broadcast %203 : vector<1x1x32xf32> to vector<1x8x32xf32>
    %205 = arith.addf %201, %204 : vector<1x8x32xf32>
    %206 = arith.addf %205, %189 : vector<1x8x32xf32>
    %cst_112 = arith.constant dense<0.000000e+00> : vector<1x8xf32>
    %207 = vector.multi_reduction <add>, %206, %cst_112 [2] : vector<1x8x32xf32> to vector<1x8xf32>
    %208 = vector.shape_cast %207 : vector<1x8xf32> to vector<1x8x1xf32>
    %cst_113 = arith.constant 3.200000e+01 : f32
    %209 = vector.broadcast %cst_113 : f32 to vector<1x8x1xf32>
    %210 = arith.divf %208, %209 : vector<1x8x1xf32>
    %211 = vector.broadcast %210 : vector<1x8x1xf32> to vector<1x8x32xf32>
    %212 = arith.subf %206, %211 : vector<1x8x32xf32>
    %213 = arith.mulf %212, %212 : vector<1x8x32xf32>
    %cst_114 = arith.constant dense<0.000000e+00> : vector<1x8xf32>
    %214 = vector.multi_reduction <add>, %213, %cst_114 [2] : vector<1x8x32xf32> to vector<1x8xf32>
    %215 = vector.shape_cast %214 : vector<1x8xf32> to vector<1x8x1xf32>
    %cst_115 = arith.constant 3.200000e+01 : f32
    %216 = vector.broadcast %cst_115 : f32 to vector<1x8x1xf32>
    %217 = arith.divf %215, %216 : vector<1x8x1xf32>
    %cst_116 = arith.constant 9.99999974E-6 : f32
    %218 = vector.broadcast %cst_116 : f32 to vector<1x8x1xf32>
    %219 = arith.addf %217, %218 : vector<1x8x1xf32>
    %220 = math.rsqrt %219 : vector<1x8x1xf32>
    %221 = vector.broadcast %220 : vector<1x8x1xf32> to vector<1x8x32xf32>
    %222 = arith.mulf %212, %221 : vector<1x8x32xf32>
    %c2_117 = arith.constant 2 : index
    %c0_118 = arith.constant 0 : index
    %c0_119 = arith.constant 0 : index
    %223 = vector.load %arg11[%c2_117, %c0_118, %c0_119] : memref<3x1x32xf32, #tpu.memory_space<vmem>>, vector<1x1x32xf32>
    %224 = vector.shape_cast %223 : vector<1x1x32xf32> to vector<1x32xf32>
    %225 = vector.shape_cast %224 : vector<1x32xf32> to vector<1x1x32xf32>
    %226 = vector.broadcast %225 : vector<1x1x32xf32> to vector<1x8x32xf32>
    %227 = arith.mulf %222, %226 : vector<1x8x32xf32>
    %c2_120 = arith.constant 2 : index
    %c0_121 = arith.constant 0 : index
    %c0_122 = arith.constant 0 : index
    %228 = vector.load %arg12[%c2_120, %c0_121, %c0_122] : memref<3x1x32xf32, #tpu.memory_space<vmem>>, vector<1x1x32xf32>
    %229 = vector.shape_cast %228 : vector<1x1x32xf32> to vector<1x32xf32>
    %230 = vector.shape_cast %229 : vector<1x32xf32> to vector<1x1x32xf32>
    %231 = vector.broadcast %230 : vector<1x1x32xf32> to vector<1x8x32xf32>
    %232 = arith.addf %227, %231 : vector<1x8x32xf32>
    %c0_123 = arith.constant 0 : index
    %c0_124 = arith.constant 0 : index
    %c0_125 = arith.constant 0 : index
    %233 = vector.load %arg17[%c0_123, %c0_124, %c0_125] : memref<1x8x32xf32, #tpu.memory_space<vmem>>, vector<1x8x32xf32>
    tpu.vector_store %arg17[%c0_123, %c0_124, %c0_125], %232 {strides = array<i32>} : memref<1x8x32xf32, #tpu.memory_space<vmem>>, vector<1x8x32xf32>,
    %234 = vector.shape_cast %151 : vector<4x8x8xf32> to vector<1x4x8x8xf32>
    %cst_126 = arith.constant dense<0.000000e+00> : vector<1x8x8xf32>
    %235 = vector.multi_reduction <add>, %234, %cst_126 [1] : vector<1x4x8x8xf32> to vector<1x8x8xf32>
    %cst_127 = arith.constant 4.000000e+00 : f32
    %236 = vector.broadcast %cst_127 : f32 to vector<1x8x8xf32>
    %237 = arith.divf %235, %236 : vector<1x8x8xf32>
    %c0_128 = arith.constant 0 : index
    %c0_129 = arith.constant 0 : index
    %c0_130 = arith.constant 0 : index
    %238 = vector.load %arg18[%c0_128, %c0_129, %c0_130] : memref<1x8x8xf32, #tpu.memory_space<vmem>>, vector<1x8x8xf32>
    tpu.vector_store %arg18[%c0_128, %c0_129, %c0_130], %237 {strides = array<i32>} : memref<1x8x8xf32, #tpu.memory_space<vmem>>, vector<1x8x8xf32>,
    return
  }
  func.func @transform_0(%arg0: i32) -> (i32, i32, i32) {
    %c0_i32 = arith.constant 0 : i32
    %c0_i32_0 = arith.constant 0 : i32
    %c0_i32_1 = arith.constant 0 : i32
    return %arg0, %c0_i32, %c0_i32_0 : i32, i32, i32
  }
  func.func @transform_1(%arg0: i32) -> (i32, i32, i32) {
    %c0_i32 = arith.constant 0 : i32
    %c0_i32_0 = arith.constant 0 : i32
    %c0_i32_1 = arith.constant 0 : i32
    return %arg0, %c0_i32, %c0_i32_0 : i32, i32, i32
  }
  func.func @transform_2(%arg0: i32) -> (i32, i32, i32, i32) {
    %c0_i32 = arith.constant 0 : i32
    %c0_i32_0 = arith.constant 0 : i32
    %c0_i32_1 = arith.constant 0 : i32
    %c0_i32_2 = arith.constant 0 : i32
    %c0_i32_3 = arith.constant 0 : i32
    return %c0_i32, %c0_i32_0, %c0_i32_1, %c0_i32_2 : i32, i32, i32, i32
  }
  func.func @transform_3(%arg0: i32) -> (i32, i32, i32, i32) {
    %c0_i32 = arith.constant 0 : i32
    %c0_i32_0 = arith.constant 0 : i32
    %c0_i32_1 = arith.constant 0 : i32
    %c0_i32_2 = arith.constant 0 : i32
    %c0_i32_3 = arith.constant 0 : i32
    return %c0_i32, %c0_i32_0, %c0_i32_1, %c0_i32_2 : i32, i32, i32, i32
  }
  func.func @transform_4(%arg0: i32) -> (i32, i32, i32) {
    %c0_i32 = arith.constant 0 : i32
    %c0_i32_0 = arith.constant 0 : i32
    %c0_i32_1 = arith.constant 0 : i32
    %c0_i32_2 = arith.constant 0 : i32
    return %c0_i32, %c0_i32_0, %c0_i32_1 : i32, i32, i32
  }
  func.func @transform_5(%arg0: i32) -> (i32, i32) {
    %c0_i32 = arith.constant 0 : i32
    %c0_i32_0 = arith.constant 0 : i32
    %c0_i32_1 = arith.constant 0 : i32
    return %c0_i32, %c0_i32_0 : i32, i32
  }
  func.func @transform_6(%arg0: i32) -> (i32, i32, i32, i32) {
    %c0_i32 = arith.constant 0 : i32
    %c0_i32_0 = arith.constant 0 : i32
    %c0_i32_1 = arith.constant 0 : i32
    %c0_i32_2 = arith.constant 0 : i32
    %c0_i32_3 = arith.constant 0 : i32
    return %c0_i32, %c0_i32_0, %c0_i32_1, %c0_i32_2 : i32, i32, i32, i32
  }
  func.func @transform_7(%arg0: i32) -> (i32, i32, i32, i32) {
    %c0_i32 = arith.constant 0 : i32
    %c0_i32_0 = arith.constant 0 : i32
    %c0_i32_1 = arith.constant 0 : i32
    %c0_i32_2 = arith.constant 0 : i32
    %c0_i32_3 = arith.constant 0 : i32
    return %c0_i32, %c0_i32_0, %c0_i32_1, %c0_i32_2 : i32, i32, i32, i32
  }
  func.func @transform_8(%arg0: i32) -> (i32, i32, i32) {
    %c0_i32 = arith.constant 0 : i32
    %c0_i32_0 = arith.constant 0 : i32
    %c0_i32_1 = arith.constant 0 : i32
    %c0_i32_2 = arith.constant 0 : i32
    return %c0_i32, %c0_i32_0, %c0_i32_1 : i32, i32, i32
  }
  func.func @transform_9(%arg0: i32) -> (i32, i32) {
    %c0_i32 = arith.constant 0 : i32
    %c0_i32_0 = arith.constant 0 : i32
    %c0_i32_1 = arith.constant 0 : i32
    return %c0_i32, %c0_i32_0 : i32, i32
  }
  func.func @transform_10(%arg0: i32) -> (i32, i32, i32) {
    %c0_i32 = arith.constant 0 : i32
    %c0_i32_0 = arith.constant 0 : i32
    %c0_i32_1 = arith.constant 0 : i32
    %c0_i32_2 = arith.constant 0 : i32
    return %c0_i32, %c0_i32_0, %c0_i32_1 : i32, i32, i32
  }
  func.func @transform_11(%arg0: i32) -> (i32, i32, i32) {
    %c0_i32 = arith.constant 0 : i32
    %c0_i32_0 = arith.constant 0 : i32
    %c0_i32_1 = arith.constant 0 : i32
    %c0_i32_2 = arith.constant 0 : i32
    return %c0_i32, %c0_i32_0, %c0_i32_1 : i32, i32, i32
  }
  func.func @transform_12(%arg0: i32) -> (i32, i32) {
    %c0_i32 = arith.constant 0 : i32
    %c0_i32_0 = arith.constant 0 : i32
    %c0_i32_1 = arith.constant 0 : i32
    return %c0_i32, %c0_i32_0 : i32, i32
  }
  func.func @transform_13(%arg0: i32) -> (i32, i32) {
    %c0_i32 = arith.constant 0 : i32
    %c0_i32_0 = arith.constant 0 : i32
    %c0_i32_1 = arith.constant 0 : i32
    return %c0_i32, %c0_i32_0 : i32, i32
  }
  func.func @transform_14(%arg0: i32) -> (i32, i32) {
    %c0_i32 = arith.constant 0 : i32
    %c0_i32_0 = arith.constant 0 : i32
    %c0_i32_1 = arith.constant 0 : i32
    return %c0_i32, %c0_i32_0 : i32, i32
  }
  func.func @transform_15(%arg0: i32) -> (i32, i32) {
    %c0_i32 = arith.constant 0 : i32
    %c0_i32_0 = arith.constant 0 : i32
    %c0_i32_1 = arith.constant 0 : i32
    return %c0_i32, %c0_i32_0 : i32, i32
  }
  func.func @transform_16(%arg0: i32) -> (i32, i32, i32) {
    %c0_i32 = arith.constant 0 : i32
    %c0_i32_0 = arith.constant 0 : i32
    %c0_i32_1 = arith.constant 0 : i32
    return %arg0, %c0_i32, %c0_i32_0 : i32, i32, i32
  }
  func.func @transform_17(%arg0: i32) -> (i32, i32, i32) {
    %c0_i32 = arith.constant 0 : i32
    %c0_i32_0 = arith.constant 0 : i32
    %c0_i32_1 = arith.constant 0 : i32
    return %arg0, %c0_i32, %c0_i32_0 : i32, i32, i32
  }
}

</mosaic_0001>

<bundles_post_ra>
// kernel: _layer_impl.1
= control target key start
LH: loop header
LB: loop body
LE: loop exit
PB: predicated region body
PF: predicated region fallthrough
CT: control target
= control target key end

     0   :  { %s6672_s0 = inlined_call_operand.vmem [shape: f32[2,8,32], index: 0, kind: input, shape index: {}]   ;;  %s6673_s1 = inlined_call_operand.vmem [shape: f32[2,8,32], index: 1, kind: input, shape index: {}]   ;;  %s6674_s2 = inlined_call_operand.vmem [shape: f32[3,4,8,32], index: 2, kind: input, shape index: {}]   ;;  %s6675_s3 = inlined_call_operand.vmem [shape: f32[3,4,1,8], index: 3, kind: input, shape index: {}]   ;;  %s6676_s4 = inlined_call_operand.vmem [shape: f32[4,8,32], index: 4, kind: input, shape index: {}]   ;;  %s6677_s5 = inlined_call_operand.vmem [shape: f32[1,32], index: 5, kind: input, shape index: {}]   ;;  %s6678_s6 = inlined_call_operand.hbm [shape: f32[3,4,8,32], index: 6, kind: input, shape index: {}]   ;;  %s6679_s7 = inlined_call_operand.vmem [shape: f32[3,4,1,8], index: 7, kind: input, shape index: {}]   ;;  %s6680_s8 = inlined_call_operand.hbm [shape: f32[4,8,32], index: 8, kind: input, shape index: {}]   ;;  %s6681_s9 = inlined_call_operand.vmem [shape: f32[1,32], index: 9, kind: input, shape index: {}]   ;;  %s6682_s10 = inlined_call_operand.vmem [shape: f32[3,1,32], index: 10, kind: input, shape index: {}]   ;;  %s6683_s11 = inlined_call_operand.hbm [shape: f32[3,1,32], index: 11, kind: input, shape index: {}]   ;;  %s6684_s12 = inlined_call_operand.hbm [shape: f32[32,64], index: 12, kind: input, shape index: {}]   ;;  %s6685_s13 = inlined_call_operand.hbm [shape: f32[1,64], index: 13, kind: input, shape index: {}]   ;;  %s6686_s14 = inlined_call_operand.vmem [shape: f32[64,32], index: 14, kind: input, shape index: {}]   ;;  %s6687_s15 = inlined_call_operand.hbm [shape: f32[1,32], index: 15, kind: input, shape index: {}]   ;;  %s6688_s16 = inlined_call_operand.vmem [shape: f32[2,8,32], index: 16, kind: output, shape index: {0}]   ;;  %s6689_s17 = inlined_call_operand.hbm [shape: f32[2,8,8], index: 17, kind: output, shape index: {1}]  }
   0x1   :  { %6699 = sst [smem:[#allocation25_spill]] %s6672_s0 }
   0x2   :  { %6700 = sst [smem:[#allocation26_spill]] %s6673_s1 }
   0x3   :  { %6701 = sst [smem:[#allocation27_spill]] %s6678_s6 }
   0x4   :  { %6702 = sst [smem:[#allocation28_spill]] %s6680_s8 }
   0x5   :  { %6703 = sst [smem:[#allocation29_spill]] %s6688_s16 }
   0x6   :  { %23 = vsyncpa [#allocation3], 0 }
   0x7   :  { %24 = vsyncpa [#allocation6], 0 }
   0x8   :  { %25 = vsyncpa [#allocation9], 0 }
   0x9   :  { %26 = vsyncpa [#allocation12], 0 }
   0xa   :  { %27 = vsyncpa [#allocation4], 0 }
   0xb   :  { %29 = vsyncpa [#allocation4 + $0x1], 0  ;;  %s6017_s24 = smov 0   ;;  %s6019_s25 = smov 0  }
   0xc   :  { %s6021_s26 = smov 0   ;;  %s6023_s27 = smov 0  }
   0xd LB: > { %6704 = sst [smem:[#allocation19_spill]] %s5900_s24  ;;  %s6038_s28 = sadd.s32 4294967295, %s5912_s27   ;;  %s5912_s27 = sphi %s6023_s27, %s6734_s27   ;;  %s5908_s26 = sphi %s6021_s26, %s6736_s26   ;;  %s5904_s25 = sphi %s6019_s25, %s6738_s25   ;;  %s5900_s24 = sphi %s6017_s24, %s6737_s24  }
   0xe   : > { %6705 = sst [smem:[#allocation20_spill]] %s5908_s26  ;;  %s4990_s29 = sadd.s32 4294967294, %s5912_s27  }
   0xf   : > { %6706 = sst [smem:[#allocation21_spill]] %s5912_s27  ;;  %s6042_s0 = sadd.s32 1, %s5912_s27  }
  0x10   : > { %6707 = sst [smem:[#allocation22_spill]] %s6042_s0  ;;  %s414_s30 = sadd.s32 1, %s5908_s26 }
  0x11   : > { %s411_s18 = ssub.s32 %s5912_s27, %s6042_s0  ;;  %p424_p0 = scmp.ne.s32.totalorder %s5908_s26, %s5904_s25 }
  0x12   : > { %p412_p1 = scmp.eq.s32.totalorder %s411_s18, 0  ;;  %p425_p2 = scmp.eq.s32.totalorder %s6038_s28, 1 }
  0x13   : > { %p430_p3 = scmp.ne.s32.totalorder %s5904_s25, %s5900_s24  ;;  %p431_p4 = scmp.eq.s32.totalorder %s4990_s29, 1 }
  0x14   : > { %s6053_s19 = scalar_select %p412_p1, %s5908_s26, %s414_s30  }
  0x15   : > { %p6055_p5 = por %p425_p2, %p424_p0  ;;  %p6059_p6 = por %p431_p4, %p430_p3 }
  0x16   : > { %6708 = sst [smem:[#allocation23_spill]] %s6053_s19  ;;  %p4991_p7 = scmp.ge.s32.totalorder %s5912_s27, 1 }
  0x17   : > { %s6709_s1 = scalar_select %p6055_p5, 1, 0 }
  0x18   : > { %s6710_s20 = scalar_select %p6059_p6, 1, 0 }
  0x19   : > { %p438_p8 = scmp.lt.s32.totalorder %s5912_s27, 3  ;;  %p6696_p9 = scmp.eq.s32.totalorder %s6038_s28, 0 }
  0x1a   : > { %6711 = sst [smem:[#allocation24_spill]] %s6710_s20  ;;  %s5914_s22 = smov [#allocation5]  }
  0x1b   : > { %p6066_p10 = pnand %p4991_p7, %p438_p8  ;;  %s478_s23 = sshll.u32 %s5914_s22, 4  ;;  %s479_s23 = int_to_ptr.vmem [resolvable:$true] %s478_s23 }
  0x1c   : > { %s5915_s30 = smov [#allocation8]   ;;  %s5916_s19 = smov [#allocation2]  }
  0x1d   : > { %s6712_s21 = scalar_select %p6066_p10, 1, 0 }
  0x1e   : > { %p5562_p11 = pneg %p6066_p10  ;;  %s510_s18 = sshll.u32 %s5915_s30, 4  ;;  %s511_s18 = int_to_ptr.vmem [resolvable:$true] %s510_s18 }
  0x1f   : > { %s462_s26 = sshll.u32 %s5916_s19, 4  ;;  %s5691_s20 = scalar_lea.vmem %s479_s23, 512  ;;  %s463_s26 = int_to_ptr.vmem [resolvable:$true] %s462_s26 }
  0x20   : > { %p6074_p12 = pnand %p6696_p9, %p5562_p11  ;;  %p5692_p0 = scmp.ne.s32.totalorder %s479_s23, %s5691_s20 }
  0x21   : > { %p5699_p3 = scmp.lt.s32.totalorder %s479_s23, %s479_s23  ;;  %p5700_p4 = scmp.lt.s32.totalorder %s5691_s20, %s5691_s20 }
  0x22   : > { %p6080_p13 = pneg %p6074_p12 }
  0x23   : > { %p5701_p7 = por %p5700_p4, %p5699_p3 }
  0x24   : > { %p5694_p1 = pnand %p5692_p0, %p6080_p13 }
  0x26   : > { %p5695_p2 = pneg %p5694_p1 }
  0x28   : > { %p5702_p8 = pnand %p5701_p7, %p5695_p2 }
  0x2a   : > { %5705 = shalt.err (!%p5702_p8)
}
  0x2b   : > { %s5917_s22 = smov 128   ;;  %s5918_s19 = smov 8  }
  0x2c   : > { %s6715_s8 = sld [smem:[#allocation28_spill]]  ;;  %s5717_s27 = scalar_lea.vmem %s511_s18, 512 }
  0x2d   : > { %p5718_p11 = scmp.ne.s32.totalorder %s511_s18, %s5717_s27  ;;  %p5725_p1 = scmp.lt.s32.totalorder %s511_s18, %s511_s18 }
  0x2e   : > { %p5726_p6 = scmp.lt.s32.totalorder %s5717_s27, %s5717_s27 }
  0x2f   : > { %p5720_p9 = pnand %p5718_p11, %p6080_p13 }
  0x30   : > { %p5727_p5 = por %p5726_p6, %p5725_p1 }
  0x31   : > { %p5721_p0 = pneg %p5720_p9 }
  0x32   : > { %5568 = dma.hbm_to_vmem [thread:$0]  (!%p6074_p12), %s6715_s8, 512, %s479_s23, [#allocation6], %s5917_s22, %s5917_s22, %s5918_s19  }
  0x33   : > { %p5728_p3 = pnand %p5727_p5, %p5721_p0 }
  0x35   : > { %5731 = shalt.err (!%p5728_p3)
}
  0x36   : > { %5574 = dma.hbm_to_vmem [thread:$0]  (!%p6074_p12), %s6684_s12, 512, %s511_s18, [#allocation9], %s5917_s22, %s5917_s22, %s5918_s19  }
  0x37   : > { %s5743_s24 = scalar_lea.vmem %s463_s26, 1536  ;;  %p5751_p8 = scmp.lt.s32.totalorder %s463_s26, %s463_s26 }
  0x38   : > { %p5744_p2 = scmp.ne.s32.totalorder %s463_s26, %s5743_s24  ;;  %p5752_p9 = scmp.lt.s32.totalorder %s5743_s24, %s5743_s24 }
  0x3a   : > { %p5746_p4 = pnand %p5744_p2, %p6080_p13  ;;  %p5753_p11 = por %p5752_p9, %p5751_p8 }
  0x3c   : > { %p5747_p7 = pneg %p5746_p4 }
  0x3e   : > { %p5754_p10 = pnand %p5753_p11, %p5747_p7 }
  0x40   : > { %5757 = shalt.err (!%p5754_p10)
}
  0x41   : > { %s6716_s6 = sld [smem:[#allocation27_spill]]  ;;  %s5919_s16 = smov [#allocation7]  }
  0x42   : > { %s497_s18 = sshll.u32 %s5919_s16, 4  ;;  %s498_s18 = int_to_ptr.vmem [resolvable:$true] %s497_s18 }
  0x43   : > { %s5769_s30 = scalar_lea.vmem %s498_s18, 48  ;;  %s5776_s20 = scalar_lea.vmem %s498_s18, 64 }
  0x44   : > { %p5770_p5 = scmp.ne.s32.totalorder %s498_s18, %s5769_s30  ;;  %p5777_p1 = scmp.lt.s32.totalorder %s498_s18, %s498_s18 }
  0x45   : > { %p5778_p3 = scmp.lt.s32.totalorder %s5776_s20, %s5769_s30 }
  0x46   : > { %p5772_p6 = pnand %p5770_p5, %p6080_p13 }
  0x47   : > { %5565 = dma.hbm_to_vmem [thread:$0]  (!%p6074_p12), %s6716_s6, 1536, %s463_s26, [#allocation3], %s5917_s22, %s5917_s22, %s5918_s19  }
  0x48   : > { %p5773_p0 = pneg %p5772_p6  ;;  %p5779_p2 = por %p5778_p3, %p5777_p1 }
  0x4a   : > { %p5780_p10 = pnand %p5779_p2, %p5773_p0 }
  0x4c   : > { %5783 = shalt.err (!%p5780_p10)
}
  0x4d   : > { %s5920_s24 = smov 16   ;;  %s5921_s27 = smov 1  }
  0x4e   : > { %5571 = dma.hbm_to_vmem [thread:$0]  (!%p6074_p12), %s6683_s11, 48, %s498_s18, [#allocation6], %s5920_s24, %s5920_s24, %s5921_s27  }
  0x4f   : > { %s5922_s19 = smov [#allocation10]   ;;  %s5923_s16 = smov [#allocation11]  }
  0x50   : > { %s524_s23 = sshll.u32 %s5922_s19, 4  ;;  %s538_s6 = sshll.u32 %s5923_s16, 4  ;;  %s525_s23 = int_to_ptr.vmem [resolvable:$true] %s524_s23  ;;  %s539_s6 = int_to_ptr.vmem [resolvable:$true] %s538_s6 }
  0x51   : > { %s5795_s8 = scalar_lea.vmem %s525_s23, 16  ;;  %s5802_s30 = scalar_lea.vmem %s525_s23, 32 }
  0x52   : > { %p5796_p4 = scmp.ne.s32.totalorder %s525_s23, %s5795_s8  ;;  %p5803_p9 = scmp.lt.s32.totalorder %s525_s23, %s525_s23 }
  0x53   : > { %p5804_p11 = scmp.lt.s32.totalorder %s5802_s30, %s5795_s8 }
  0x54   : > { %p5798_p7 = pnand %p5796_p4, %p6080_p13 }
  0x55   : > { %p5805_p5 = por %p5804_p11, %p5803_p9 }
  0x56   : > { %p5799_p8 = pneg %p5798_p7 }
  0x58   : > { %p5806_p6 = pnand %p5805_p5, %p5799_p8 }
  0x5a   : > { %5809 = shalt.err (!%p5806_p6)
}
  0x5b   : > { %5577 = dma.hbm_to_vmem [thread:$0]  (!%p6074_p12), %s6685_s13, 16, %s525_s23, [#allocation9]  }
  0x5c   : > { %s5821_s24 = scalar_lea.vmem %s539_s6, 16  ;;  %s5828_s27 = scalar_lea.vmem %s539_s6, 32 }
  0x5d   : > { %p5822_p0 = scmp.ne.s32.totalorder %s539_s6, %s5821_s24  ;;  %p5829_p2 = scmp.lt.s32.totalorder %s539_s6, %s539_s6 }
  0x5e   : > { %p5830_p10 = scmp.lt.s32.totalorder %s5828_s27, %s5821_s24 }
  0x5f   : > { %p5824_p1 = pnand %p5822_p0, %p6080_p13 }
  0x60   : > { %p5831_p4 = por %p5830_p10, %p5829_p2 }
  0x61   : > { %p5825_p3 = pneg %p5824_p1 }
  0x63   : > { %p5832_p7 = pnand %p5831_p4, %p5825_p3 }
  0x65   : > { %5835 = shalt.err (!%p5832_p7)
}
  0x66   : > { %5580 = dma.hbm_to_vmem [thread:$0]  (!%p6074_p12), %s6687_s15, 16, %s539_s6, [#allocation12]  }
  0x67   : > { %p6717_p8 = scmp.ne.s32.totalorder %s6712_s21, 0 }
  0x68   : > { %p6718_p9 = scmp.eq.s32.totalorder (!%p6717_p8), %s6038_s28, 0 }
  0x69   : > { %565 = sbr.rel (%p6717_p8) target bundleno = 3676 (0xe5c), region = 84 }
  0x6e   : > { %5879 = dma.done.wait (%p6718_p9), [#allocation3], 1536   ;;  %p6719_p13 = pmov %p6718_p9 }
  0x6f   : > { %p6720_p11 = pmov %p6718_p9 }
  0x70   : > { %5881 = vsyncadd (%p6719_p13), [#allocation3], 4294965760 }
  0x71   : > { %5883 = dma.done.wait (%p6720_p11), [#allocation6], 560   ;;  %p6721_p5 = pmov %p6718_p9 }
  0x73   : > { %5885 = vsyncadd (%p6721_p5), [#allocation6], 4294966736  ;;  %p6722_p6 = pmov %p6721_p5 }
  0x74   : > { %p6723_p12 = pmov %p6721_p5 }
  0x75   : > { %5887 = dma.done.wait (%p6722_p6), [#allocation9], 528  }
  0x76   : > { %5889 = vsyncadd (%p6723_p12), [#allocation9], 4294966768  ;;  %p6724_p0 = pmov %p6721_p5 }
  0x78   : > { %5891 = dma.done.wait (%p6724_p0), [#allocation12], 16   ;;  %p6725_p1 = pmov %p6724_p0 }
  0x79   : > { %p644_p3 = scmp.lt.s32.totalorder %s6038_s28, 1  ;;  %v5924_v0 = vmov 0.0   ;;  %vm5925_vm0 = vmmov 0   ;;  %vm710_vm1 = vcmask 261120   ;;  %s6726_s22 = sld [smem:[#allocation25_spill]]  ;;  %v658_v1 = vld [vmem:[%s6674_s2] sm:$0xff]  ;;  %v1943_v59 = vlaneseq }
  0x7a   : > { %5893 = vsyncadd (%p6725_p1), [#allocation12], 4294967280  ;;  %5266 = vmatprep.subr.mxu0 %v5924_v0  ;;  %5281 = vmatprep.subr.mxu1 %v5924_v0  ;;  %v661_v2 = vld [vmem:[%s6674_s2 + $0x18] sm:$0xff]  ;;  %v659_v4 = vld [vmem:[%s6674_s2 + $0x8] sm:$0xff]  ;;  %vm1638_vm2 = vcmask 64512   ;;  %s6727_s27 = sld [smem:[#allocation26_spill]] }
  0x7b   : > { %5268 = vmatprep.mubr.msk.f32.mxu0 %vm5925_vm0, %v5924_v0  ;;  %5283 = vmatprep.mubr.msk.f32.mxu1 %vm5925_vm0, %v5924_v0  ;;  %s645_s6 = scalar_select %p644_p3, %s6038_s28, 1  ;;  %v5011_v5 = vld [vmem:[%s6674_s2 + $0x28] sm:$0xff]  ;;  %v660_v6 = vld [vmem:[%s6674_s2 + $0x10] sm:$0xff]  ;;  %v5013_v7 = vld [vmem:[%s6674_s2 + $0x38] sm:$0xff]  ;;  %v1944_v61 = vshrl.u32 %v1943_v59, 7  ;;  %v1946_v62 = vand.u32 127, %v1943_v59 }
  0x7c   : > { %5267 = vmatpush3.xpose.msk.msra.mxu0 %vm710_vm1, %v658_v1  ;;  %5282 = vmatpush3.xpose.msk.msra.mxu1 %vm710_vm1, %v661_v2  ;;  %v5010_v8 = vld [vmem:[%s6674_s2 + $0x20] sm:$0xff]  ;;  %v5015_v9 = vld [vmem:[%s6674_s2 + $0x48] sm:$0xff]  ;;  %v5012_v10 = vld [vmem:[%s6674_s2 + $0x30] sm:$0xff]  ;;  %s641_s20 = sand.u32 1, %s5904_s25   ;;  %vm4697_vm4 = vcmask 523264   ;;  %s5153_s30 = sshll.u32 %s6038_s28, 7 }
  0x7d   : > { %s6152_s0 = sshll.u32 %s645_s6, 3  ;;  %5271 = vmatprep.subr.mxu0 %v5924_v0  ;;  %5291 = vmatprep.subr.mxu1 %v5924_v0  ;;  %v5017_v11 = vld [vmem:[%s6674_s2 + $0x58] sm:$0xff]  ;;  %v5014_v12 = vld [vmem:[%s6674_s2 + $0x40] sm:$0xff]  ;;  %v5016_v13 = vld [vmem:[%s6674_s2 + $0x50] sm:$0xff]  ;;  %vm1947_vm3 = vcmp.le.s32.totalorder %v1946_v62, %v1944_v61  ;;  %s6554_s24 = sshll.u32 %s641_s20, 3 }
  0x7e   : > { %v5039_v18 = vld [vmem:[%s6675_s3 + $0x5] ss:$0 sm:$0xff]  ;;  %v5027_v21 = vld [vmem:[%s6675_s3 + $0x1] ss:$0 sm:$0xff]  ;;  %v5041_v25 = vld [vmem:[%s6675_s3 + $0x7] ss:$0 sm:$0xff]  ;;  %s4833_s6 = scalar_lea.hbm %s6689_s17, %s5153_s30 }
  0x7f   : > { %s647_s19 = scalar_lea.vmem %s6726_s22, %s6152_s0  ;;  %v5029_v26 = vld [vmem:[%s6675_s3 + $0x3] ss:$0 sm:$0xff]  ;;  %v5038_v33 = vld [vmem:[%s6675_s3 + $0x4] ss:$0 sm:$0xff]  ;;  %v5051_v36 = vld [vmem:[%s6675_s3 + $0x9] ss:$0 sm:$0xff] }
  0x80   : > { %v6166_v3 = vld [vmem:[%s647_s19] sm:$0xff]  ;;  %v5050_v51 = vld [vmem:[%s6675_s3 + $0x8] ss:$0 sm:$0xff]  ;;  %s651_s8 = scalar_lea.vmem %s6727_s27, %s6152_s0  ;;  %s643_s27 = scalar_lea.vmem [#allocation13], %s6554_s24 }
  0x81   : > { %5269 = vmatmul.mubr.msk.f32.vlgmr.msra.gmra.mxu0 %vm710_vm1, %v6166_v3  ;;  %5284 = vmatmul.mubr.msk.f32.vlgmr.msra.gmra.mxu1 %vm710_vm1, %v6166_v3  ;;  %v5026_v37 = vld [vmem:[%s6675_s3] ss:$0 sm:$0xff]  ;;  %v5040_v40 = vld [vmem:[%s6675_s3 + $0x6] ss:$0 sm:$0xff]  ;;  %v5028_v46 = vld [vmem:[%s6675_s3 + $0x2] ss:$0 sm:$0xff] }
  0x82   : > { %5272 = vmatpush3.xpose.msk.msra.mxu0 %vm710_vm1, %v659_v4  ;;  %5292 = vmatpush3.xpose.msk.msra.mxu1 %vm710_vm1, %v5011_v5  ;;  %s4835_s18 = sshll.u32 %s643_s27, 4  ;;  %s4819_s21 = scalar_lea.sflag [#allocation4], %s641_s20  ;;  %s4836_s18 = int_to_ptr.vmem [resolvable:$true] %s4835_s18 }
  0x83   : > { %5273 = vmatprep.mubr.msk.f32.mxu0 %vm5925_vm0, %v5924_v0  ;;  %5293 = vmatprep.mubr.msk.f32.mxu1 %vm5925_vm0, %v5924_v0  ;;  %s5836_s29 = scalar_lea.vmem %s4836_s18, 128  ;;  %p6728_p10 = scmp.ne.s32.totalorder %s6709_s1, 0 }
  0x84   : > { %5276 = vmatprep.subr.mxu0 %v5924_v0  ;;  %5301 = vmatprep.subr.mxu1 %v5924_v0  ;;  %p5837_p2 = scmp.ne.s32.totalorder %s4836_s18, %s5836_s29  ;;  %s5926_s22 = smov [#allocation13]  }
  0x85   : > { %5274 = vmatmul.mubr.msk.f32.vlgmr.msra.gmra.mxu0 %vm710_vm1, %v6166_v3  ;;  %5294 = vmatmul.mubr.msk.f32.vlgmr.msra.gmra.mxu1 %vm710_vm1, %v6166_v3  ;;  %s5840_s19 = sshll.u32 %s5926_s22, 4  ;;  %s5841_s19 = int_to_ptr.vmem [resolvable:$false] %s5840_s19 }
  0x86   : > { %5277 = vmatpush3.xpose.msk.msra.mxu0 %vm710_vm1, %v660_v6  ;;  %5302 = vmatpush3.xpose.msk.msra.mxu1 %vm710_vm1, %v5013_v7  ;;  %p5838_p4 = pnand %p5837_p2, %p6728_p10  ;;  %s5842_s23 = scalar_lea.vmem %s5841_s19, 256 }
  0x87   : > { %5278 = vmatprep.mubr.msk.f32.mxu0 %vm5925_vm0, %v5924_v0  ;;  %5303 = vmatprep.mubr.msk.f32.mxu1 %vm5925_vm0, %v5924_v0  ;;  %p5843_p8 = scmp.lt.s32.totalorder %s4836_s18, %s5841_s19  ;;  %p5844_p9 = scmp.lt.s32.totalorder %s5842_s23, %s5836_s29 }
  0x88   : > { %5286 = vmatprep.subr.mxu0 %v5924_v0  ;;  %5311 = vmatprep.subr.mxu1 %v5924_v0  ;;  %p5839_p7 = pneg %p5838_p4 }
  0x89   : > { %5279 = vmatmul.mubr.msk.f32.vlgmr.msra.gmra.mxu0 %vm710_vm1, %v6166_v3  ;;  %5304 = vmatmul.mubr.msk.f32.vlgmr.msra.gmra.mxu1 %vm710_vm1, %v6166_v3  ;;  %p5845_p13 = por %p5844_p9, %p5843_p8 }
  0x8a   : > { %5287 = vmatpush3.xpose.msk.msra.mxu0 %vm710_vm1, %v5010_v8  ;;  %5288 = vmatprep.mubr.msk.f32.mxu0 %vm5925_vm0, %v5924_v0 }
  0x8b   : > { %5296 = vmatprep.subr.mxu0 %v5924_v0  ;;  %5312 = vmatpush3.xpose.msk.msra.mxu1 %vm710_vm1, %v5015_v9  ;;  %p5846_p11 = pnand %p5845_p13, %p5839_p7 }
  0x8c   : > { %5313 = vmatprep.mubr.msk.f32.mxu1 %vm5925_vm0, %v5924_v0  ;;  %5321 = vmatprep.subr.mxu1 %v5924_v0 }
  0x8d   : > { %5289 = vmatmul.mubr.msk.f32.vlgmr.msra.gmra.mxu0 %vm710_vm1, %v6166_v3 }
  0x8e   : > { %5297 = vmatpush3.xpose.msk.msra.mxu0 %vm710_vm1, %v5012_v10  ;;  %5298 = vmatprep.mubr.msk.f32.mxu0 %vm5925_vm0, %v5924_v0 }
  0x8f   : > { %5314 = vmatmul.mubr.msk.f32.vlgmr.msra.gmra.mxu1 %vm710_vm1, %v6166_v3  ;;  %5306 = vmatprep.subr.mxu0 %v5924_v0 }
  0x90   : > { %5323 = vmatprep.mubr.msk.f32.mxu1 %vm5925_vm0, %v5924_v0  ;;  %5322 = vmatpush3.xpose.msk.msra.mxu1 %vm710_vm1, %v5017_v11 }
  0x91   : > { %5299 = vmatmul.mubr.msk.f32.vlgmr.msra.gmra.mxu0 %vm710_vm1, %v6166_v3  ;;  %5331 = vmatprep.subr.mxu1 %v5924_v0 }
  0x92   : > { %5308 = vmatprep.mubr.msk.f32.mxu0 %vm5925_vm0, %v5924_v0  ;;  %5307 = vmatpush3.xpose.msk.msra.mxu0 %vm710_vm1, %v5014_v12 }
  0x93   : > { %5324 = vmatmul.mubr.msk.f32.vlgmr.msra.gmra.mxu1 %vm710_vm1, %v6166_v3  ;;  %5316 = vmatprep.subr.mxu0 %v5924_v0 }
  0x94   : > { %5333 = vmatprep.mubr.msk.f32.mxu1 %vm5925_vm0, %v5924_v0 }
  0x95   : > { %5309 = vmatmul.mubr.msk.f32.vlgmr.msra.gmra.mxu0 %vm710_vm1, %v6166_v3 }
  0x96   : > { %5317 = vmatpush3.xpose.msk.msra.mxu0 %vm710_vm1, %v5016_v13  ;;  %5318 = vmatprep.mubr.msk.f32.mxu0 %vm5925_vm0, %v5924_v0 }
  0x97   : > { %5326 = vmatprep.subr.mxu0 %v5924_v0 }
  0x99   : > { %5319 = vmatmul.mubr.msk.f32.vlgmr.msra.gmra.mxu0 %vm710_vm1, %v6166_v3 }
  0x9a   : > { %5328 = vmatprep.mubr.msk.f32.mxu0 %vm5925_vm0, %v5924_v0 }
 0x141   : > { %v783_v14 = vpop.f32.mrf.mxu0  ;;  %v1002_v15 = vpop.f32.mrf.mxu1 }
 0x142   : > { %v1003_v31 = vadd.f32 %v5029_v26, %v1002_v15  ;;  %v784_v43 = vadd.f32 %v5026_v37, %v783_v14 }
 0x143   : > { %v5270_v16 = vpop.f32.mrf.mxu0  ;;  %v5285_v17 = vpop.f32.mrf.mxu1 }
 0x145   : > { %v856_v19 = vpop.f32.mrf.mxu0  ;;  %v1172_v20 = vpop.f32.mrf.mxu1 }
 0x146   : > { %v1173_v22 = vadd.f32 %v5039_v18, %v1172_v20  ;;  %v857_v27 = vadd.f32 %v5027_v21, %v856_v19 }
 0x147   : > { %v5275_v23 = vpop.f32.mrf.mxu0  ;;  %v5295_v24 = vpop.f32.mrf.mxu1 }
 0x148   : > { %5332 = vmatpush3.xpose.msk.msra.mxu1 %vm1638_vm2, %v1173_v22 }
 0x149   : > { %v929_v28 = vpop.f32.mrf.mxu0  ;;  %v1318_v29 = vpop.f32.mrf.mxu1  ;;  %5341 = vmatprep.subr.mxu1 %v5924_v0 }
 0x14a   : > { %v1319_v30 = vadd.f32 %v5041_v25, %v1318_v29  ;;  %v930_v49 = vadd.f32 %v5028_v46, %v929_v28 }
 0x14b   : > { %v5280_v32 = vpop.f32.mrf.mxu0  ;;  %5334 = vmatmul.mubr.msk.f32.vlgmr.msra.gmra.mxu1 %vm1638_vm2, %v857_v27  ;;  %v5305_v34 = vpop.f32.mrf.mxu1 }
 0x14c   : > { %5342 = vmatpush3.xpose.msk.msra.mxu1 %vm1638_vm2, %v1319_v30  ;;  %5343 = vmatprep.mubr.msk.f32.mxu1 %vm5925_vm0, %v5924_v0 }
 0x14d   : > { %v1099_v35 = vpop.f32.mrf.mxu0  ;;  %5351 = vmatprep.subr.mxu1 %v5924_v0 }
 0x14e   : > { %v1100_v38 = vadd.f32 %v5038_v33, %v1099_v35 }
 0x14f   : > { %v5290_v39 = vpop.f32.mrf.mxu0  ;;  %5344 = vmatmul.mubr.msk.f32.vlgmr.msra.gmra.mxu1 %vm1638_vm2, %v1003_v31  ;;  %v1488_v41 = vpop.f32.mrf.mxu1 }
 0x150   : > { %5327 = vmatpush3.xpose.msk.msra.mxu0 %vm1638_vm2, %v1100_v38  ;;  %v1489_v42 = vadd.f32 %v5051_v36, %v1488_v41  ;;  %5353 = vmatprep.mubr.msk.f32.mxu1 %vm5925_vm0, %v5924_v0  ;;  %v5052_v39 = vld [vmem:[%s6675_s3 + $0xa] ss:$0 sm:$0xff] }
 0x151   : > { %v1245_v44 = vpop.f32.mrf.mxu0  ;;  %5336 = vmatprep.subr.mxu0 %v5924_v0  ;;  %v5315_v45 = vpop.f32.mrf.mxu1 }
 0x152   : > { %v1246_v47 = vadd.f32 %v5040_v40, %v1245_v44  ;;  %5352 = vmatpush3.msra.mxu1 %v1489_v42 }
 0x153   : > { %v5300_v48 = vpop.f32.mrf.mxu0  ;;  %5329 = vmatmul.mubr.msk.f32.vlgmr.msra.gmra.mxu0 %vm1638_vm2, %v784_v43  ;;  %5361 = vmatprep.subr.mxu1 %v5924_v0  ;;  %v6316_v50 = vpop.f32.mrf.mxu1  ;;  %v5053_v43 = vld [vmem:[%s6675_s3 + $0xb] ss:$0 sm:$0xff] }
 0x154   : > { %5337 = vmatpush3.xpose.msk.msra.mxu0 %vm1638_vm2, %v1246_v47  ;;  %5338 = vmatprep.mubr.msk.f32.mxu0 %vm5925_vm0, %v5924_v0  ;;  %v1635_v47 = vadd.f32 %v5053_v43, %v6316_v50  ;;  %v2290_v50 = vld [vmem:[%s6676_s4] sm:$0xff]  ;;  %v2643_v43 = vld [vmem:[#allocation2 + $0x48] sm:$0xff] }
 0x155   : > { %5346 = vmatprep.subr.mxu0 %v5924_v0  ;;  %v1415_v52 = vpop.f32.mrf.mxu0  ;;  %v5325_v53 = vpop.f32.mrf.mxu1 }
 0x156   : > { %v1416_v54 = vadd.f32 %v5050_v51, %v1415_v52  ;;  %v2291_v52 = vld [vmem:[%s6676_s4 + $0x8] sm:$0xff]  ;;  %v2292_v53 = vld [vmem:[%s6676_s4 + $0x10] sm:$0xff] }
 0x157   : > { %5339 = vmatmul.mubr.msk.f32.vlgmr.msra.gmra.mxu0 %vm1638_vm2, %v930_v49  ;;  %v5310_v55 = vpop.f32.mrf.mxu0 }
 0x158   : > { %5348 = vmatprep.mubr.msk.f32.mxu0 %vm5925_vm0, %v5924_v0  ;;  %5347 = vmatpush3.msra.mxu0 %v1416_v54 }
 0x159   : > { %v6321_v56 = vpop.f32.mrf.mxu0  ;;  %5356 = vmatprep.subr.mxu0 %v5924_v0 }
 0x15a   : > { %v1562_v42 = vadd.f32 %v5052_v39, %v6321_v56  ;;  %v2293_v56 = vld [vmem:[%s6676_s4 + $0x18] sm:$0xff]  ;;  %v657_v39 = vld [vmem:[%s651_s8] sm:$0xff] }
 0x15b   : > { %v5320_v57 = vpop.f32.mrf.mxu0 }
 0x20b   : > { %v1787_v58 = vpop.f32.mrf.mxu1 }
 0x20c   : > { %v1951_v7 = vsel %vm1947_vm3, %v1787_v58, -1e+09 }
 0x20d   : > { %v5335_v60 = vpop.f32.mrf.mxu1  ;;  %v1957_v11 = vsel %vm1638_vm2, %v1951_v7, -inf }
 0x20f   : > { %v1939_v63 = vpop.f32.mrf.mxu1 }
 0x210   : > { %v1953_v13 = vsel %vm1947_vm3, %v1939_v63, -1e+09 }
 0x211   : > { %v5345_v1 = vpop.f32.mrf.mxu1  ;;  %v1963_v14 = vsel %vm1638_vm2, %v1953_v13, -inf }
 0x213   : > { %v1711_v2 = vpop.f32.mrf.mxu0 }
 0x214   : > { %v1950_v4 = vsel %vm1947_vm3, %v1711_v2, -1e+09 }
 0x215   : > { %v5330_v5 = vpop.f32.mrf.mxu0  ;;  %v1954_v6 = vsel %vm1638_vm2, %v1950_v4, -inf }
 0x216   : > { %1955 = vmax.xlane.f32.xlu0 %v1954_v6 }
 0x217   : > { %v1863_v8 = vpop.f32.mrf.mxu0 }
 0x218   : > { %v1952_v9 = vsel %vm1947_vm3, %v1863_v8, -1e+09 }
 0x219   : > { %v5340_v10 = vpop.f32.mrf.mxu0  ;;  %v1960_v12 = vsel %vm1638_vm2, %v1952_v9, -inf }
 0x21a   : > { %1958 = vmax.xlane.f32.xlu0 %v1957_v11  ;;  %1961 = vmax.xlane.f32.xlu1 %v1960_v12 }
 0x21e   : > { %1964 = vmax.xlane.f32.xlu1 %v1963_v14  ;;  %v5078_v14 = vld [vmem:[%s6677_s5] ss:$0 sm:$0xff] }
 0x29f   : > { %v1956_v15 = vpop.xlane.xlu0 %1955 }
 0x2a0   : > { %v1966_v16 = vsub.f32 %v1950_v4, %v1956_v15 }
 0x2a2   : > { %v1970_v17 = vmul.f32 1.442695, %v1966_v16 }
 0x2a3   : > { %v1959_v18 = vpop.xlane.xlu0 %1958  ;;  %v1962_v19 = vpop.xlane.xlu1 %1961 }
 0x2a4   : > { %5642 = vpow2.f32 %v1970_v17  ;;  %v1967_v20 = vsub.f32 %v1951_v7, %v1959_v18  ;;  %v1968_v21 = vsub.f32 %v1952_v9, %v1962_v19 }
 0x2a6   : > { %v1972_v22 = vmul.f32 1.442695, %v1967_v20  ;;  %v1974_v23 = vmul.f32 1.442695, %v1968_v21 }
 0x2a7   : > { %v1965_v24 = vpop.xlane.xlu1 %1964 }
 0x2a8   : > { %5644 = vpow2.f32 %v1972_v22  ;;  %v1969_v25 = vsub.f32 %v1953_v13, %v1965_v24 }
 0x2a9   : > { %5646 = vpow2.f32 %v1974_v23 }
 0x2aa   : > { %v1976_v26 = vmul.f32 1.442695, %v1969_v25  ;;  %v2632_v25 = vld [vmem:[#allocation2] sm:$0xff] }
 0x2ac   : > { %5648 = vpow2.f32 %v1976_v26  ;;  %v2633_v26 = vld [vmem:[#allocation2 + $0x8] sm:$0xff] }
 0x2b1   : > { %v5643_v27 = vpop.eup %5642 }
 0x2b2   : > { %v1978_v28 = vsel %vm1638_vm2, %v5643_v27, 0.0 }
 0x2b3   : > { %1979 = vadd.xlane.f32.xlu0 %v1978_v28 }
 0x2b5   : > { %v5645_v29 = vpop.eup %5644 }
 0x2b6   : > { %v5647_v30 = vpop.eup %5646  ;;  %v1981_v31 = vsel %vm1638_vm2, %v5645_v29, 0.0 }
 0x2b7   : > { %1982 = vadd.xlane.f32.xlu1 %v1981_v31  ;;  %v1984_v32 = vsel %vm1638_vm2, %v5647_v30, 0.0 }
 0x2b8   : > { %1985 = vadd.xlane.f32.xlu0 %v1984_v32  ;;  %v5080_v32 = vld [vmem:[#allocation7] ss:$0 sm:$0xff] }
 0x2b9   : > { %v5649_v33 = vpop.eup %5648 }
 0x2ba   : > { %v1987_v34 = vsel %vm1638_vm2, %v5649_v33, 0.0 }
 0x2bb   : > { %1988 = vadd.xlane.f32.xlu1 %v1987_v34 }
 0x33c   : > { %v1980_v35 = vpop.xlane.xlu0 %1979 }
 0x33d   : > { %5650 = vrcp.f32 %v1980_v35  ;;  %v2634_v35 = vld [vmem:[#allocation2 + $0x10] sm:$0xff] }
 0x340   : > { %v1983_v36 = vpop.xlane.xlu1 %1982 }
 0x341   : > { %v1986_v37 = vpop.xlane.xlu0 %1985  ;;  %5652 = vrcp.f32 %v1983_v36  ;;  %v2635_v36 = vld [vmem:[#allocation2 + $0x18] sm:$0xff] }
 0x342   : > { %5654 = vrcp.f32 %v1986_v37  ;;  %v2637_v37 = vld [vmem:[#allocation2 + $0x20] sm:$0xff] }
 0x344   : > { %v1989_v38 = vpop.xlane.xlu1 %1988 }
 0x345   : > { %5656 = vrcp.f32 %v1989_v38  ;;  %v2638_v38 = vld [vmem:[#allocation2 + $0x28] sm:$0xff] }
 0x34a   : > { %v5651_v40 = vpop.eup %5650 }
 0x34b   : > { %v1994_v41 = vmul.f32 %v5651_v40, %v5643_v27  ;;  %v2639_v40 = vld [vmem:[#allocation2 + $0x30] sm:$0xff] }
 0x34d   : > { %5349 = vmatmul.mubr.msk.f32.vlgmr.msra.gmra.mxu0 %vm1638_vm2, %v1994_v41  ;;  %v2640_v41 = vld [vmem:[#allocation2 + $0x38] sm:$0xff] }
 0x34e   : > { %v5653_v44 = vpop.eup %5652  ;;  %5357 = vmatpush3.msra.mxu0 %v1562_v42  ;;  %5358 = vmatprep.mubr.msk.f32.mxu0 %vm5925_vm0, %v5924_v0  ;;  %v2642_v42 = vld [vmem:[#allocation2 + $0x40] sm:$0xff] }
 0x34f   : > { %v5655_v45 = vpop.eup %5654  ;;  %v1995_v46 = vmul.f32 %v5653_v44, %v5645_v29  ;;  %5366 = vmatprep.subr.mxu0 %v5924_v0  ;;  %v2644_v44 = vld [vmem:[#allocation2 + $0x50] sm:$0xff] }
 0x350   : > { %v1996_v48 = vmul.f32 %v5655_v45, %v5647_v30  ;;  %v5079_v30 = vld [vmem:[%s6682_s10] ss:$0 sm:$0xff]  ;;  %v2645_v45 = vld [vmem:[#allocation2 + $0x58] sm:$0xff] }
 0x351   : > { %5354 = vmatmul.mubr.msk.f32.vlgmr.msra.gmra.mxu1 %vm1638_vm2, %v1995_v46 }
 0x352   : > { %v5657_v49 = vpop.eup %5656  ;;  %5359 = vmatmul.mubr.msk.f32.vlgmr.msra.gmra.mxu0 %vm1638_vm2, %v1996_v48  ;;  %5362 = vmatpush3.msra.mxu1 %v1635_v47 }
 0x353   : > { %5363 = vmatprep.mubr.msk.f32.mxu1 %vm5925_vm0, %v5924_v0  ;;  %v1997_v51 = vmul.f32 %v5657_v49, %v5649_v33  ;;  %5368 = vmatprep.mubr.msk.f32.mxu0 %vm5925_vm0, %v5924_v0 }
 0x354   : > { %5371 = vmatprep.subr.mxu1 %v5924_v0  ;;  %5367 = vmatpush3.msra.mxu0 %v2290_v50 }
 0x355   : > { %5364 = vmatmul.mubr.msk.f32.vlgmr.msra.gmra.mxu1 %vm1638_vm2, %v1997_v51  ;;  %5376 = vmatprep.subr.mxu0 %v5924_v0 }
 0x356   : > { %5373 = vmatprep.mubr.msk.f32.mxu1 %vm5925_vm0, %v5924_v0  ;;  %5372 = vmatpush3.msra.mxu1 %v2291_v52 }
 0x357   : > { %5381 = vmatprep.subr.mxu1 %v5924_v0 }
 0x40d   : > { %v2067_v54 = vpop.f32.mrf.mxu0 }
 0x40e   : > { %5369 = vmatmul.mubr.msk.f32.vlgmr.msra.gmra.mxu0 %vm1638_vm2, %v2067_v54  ;;  %v5101_v54 = vld [vmem:[%s6679_s7 + $0x4] ss:$0 sm:$0xff] }
 0x40f   : > { %v5350_v55 = vpop.f32.mrf.mxu0  ;;  %5377 = vmatpush3.msra.mxu0 %v2292_v53  ;;  %5378 = vmatprep.mubr.msk.f32.mxu0 %vm5925_vm0, %v5924_v0 }
 0x410   : > { %5386 = vmatprep.subr.mxu0 %v5924_v0  ;;  %v5102_v55 = vld [vmem:[%s6679_s7 + $0x5] ss:$0 sm:$0xff] }
 0x411   : > { %v2140_v57 = vpop.f32.mrf.mxu1 }
 0x412   : > { %v2213_v58 = vpop.f32.mrf.mxu0  ;;  %5374 = vmatmul.mubr.msk.f32.vlgmr.msra.gmra.mxu1 %vm1638_vm2, %v2140_v57 }
 0x413   : > { %5379 = vmatmul.mubr.msk.f32.vlgmr.msra.gmra.mxu0 %vm1638_vm2, %v2213_v58  ;;  %v5355_v59 = vpop.f32.mrf.mxu1  ;;  %5382 = vmatpush3.msra.mxu1 %v2293_v56  ;;  %v5089_v58 = vld [vmem:[%s6679_s7] ss:$0 sm:$0xff] }
 0x414   : > { %v5360_v60 = vpop.f32.mrf.mxu0  ;;  %5383 = vmatprep.mubr.msk.f32.mxu1 %vm5925_vm0, %v5924_v0  ;;  %5391 = vmatprep.subr.mxu1 %v5924_v0  ;;  %v5090_v59 = vld [vmem:[%s6679_s7 + $0x1] ss:$0 sm:$0xff] }
 0x415   : > { %v2286_v61 = vpop.f32.mrf.mxu1  ;;  %5388 = vmatprep.mubr.msk.f32.mxu0 %vm5925_vm0, %v5924_v0  ;;  %5387 = vmatpush3.xpose.msk.msra.mxu0 %vm710_vm1, %v2632_v25 }
 0x416   : > { %5384 = vmatmul.mubr.msk.f32.vlgmr.msra.gmra.mxu1 %vm1638_vm2, %v2286_v61  ;;  %5396 = vmatprep.subr.mxu0 %v5924_v0 }
 0x417   : > { %v5365_v62 = vpop.f32.mrf.mxu1  ;;  %5393 = vmatprep.mubr.msk.f32.mxu1 %vm5925_vm0, %v5924_v0  ;;  %5392 = vmatpush3.xpose.msk.msra.mxu1 %vm710_vm1, %v2633_v26 }
 0x418   : > { %5401 = vmatprep.subr.mxu1 %v5924_v0 }
 0x4ce   : > { %v2363_v63 = vpop.f32.mrf.mxu0 }
 0x4cf   : > { %v2586_v4 = vsel %vm710_vm1, %v2363_v63, 0.0 }
 0x4d0   : > { %v5370_v1 = vpop.f32.mrf.mxu0 }
 0x4d1   : > { %v5103_v1 = vld [vmem:[%s6679_s7 + $0x6] ss:$0 sm:$0xff] }
 0x4d2   : > { %v2436_v2 = vpop.f32.mrf.mxu1 }
 0x4d3   : > { %v2587_v5 = vsel %vm710_vm1, %v2436_v2, 0.0  ;;  %v2509_v6 = vpop.f32.mrf.mxu0  ;;  %v5104_v2 = vld [vmem:[%s6679_s7 + $0x7] ss:$0 sm:$0xff] }
 0x4d4   : > { %v2588_v7 = vadd.f32 %v2587_v5, %v2586_v4  ;;  %v5375_v8 = vpop.f32.mrf.mxu1  ;;  %v2589_v9 = vsel %vm710_vm1, %v2509_v6, 0.0 }
 0x4d5   : > { %v5380_v10 = vpop.f32.mrf.mxu0  ;;  %v5091_v8 = vld [vmem:[%s6679_s7 + $0x2] ss:$0 sm:$0xff] }
 0x4d6   : > { %v2590_v11 = vadd.f32 %v2589_v9, %v2588_v7  ;;  %v2582_v12 = vpop.f32.mrf.mxu1  ;;  %v5092_v9 = vld [vmem:[%s6679_s7 + $0x3] ss:$0 sm:$0xff] }
 0x4d7   : > { %v2591_v13 = vsel %vm710_vm1, %v2582_v12, 0.0 }
 0x4d8   : > { %v2592_v15 = vadd.f32 %v2591_v13, %v2590_v11  ;;  %v5385_v16 = vpop.f32.mrf.mxu1 }
 0x4d9   : > { %v5113_v16 = vld [vmem:[%s6679_s7 + $0x8] ss:$0 sm:$0xff] }
 0x4da   : > { %v2600_v17 = vadd.f32 %v5078_v14, %v2592_v15 }
 0x4dc   : > { %v2601_v18 = vadd.f32 %v2600_v17, %v6166_v3  ;;  %v5114_v17 = vld [vmem:[%s6679_s7 + $0x9] ss:$0 sm:$0xff] }
 0x4de   : > { %v2602_v19 = vsel %vm710_vm1, %v2601_v18, 0.0 }
 0x4df   : > { %2603 = vadd.xlane.f32.xlu0 %v2602_v19 }
 0x568   : > { %v2604_v20 = vpop.xlane.xlu0 %2603 }
 0x569   : > { %v2606_v21 = vmul.f32 0.03125, %v2604_v20 }
 0x56b   : > { %v2607_v22 = vsub.f32 %v2601_v18, %v2606_v21 }
 0x56d   : > { %v2608_v23 = vmul.f32 %v2607_v22, %v2607_v22 }
 0x56f   : > { %v2609_v24 = vsel %vm710_vm1, %v2608_v23, 0.0 }
 0x570   : > { %2610 = vadd.xlane.f32.xlu1 %v2609_v24 }
 0x5f9   : > { %v2611_v3 = vpop.xlane.xlu1 %2610 }
 0x5fa   : > { %v2612_v27 = vmul.f32 0.03125, %v2611_v3 }
 0x5fc   : > { %v2613_v28 = vadd.f32 1e-05, %v2612_v27 }
 0x5fe   : > { %5658 = vrsqrt.f32 %v2613_v28 }
 0x60b   : > { %v5659_v29 = vpop.eup %5658 }
 0x60c   : > { %v2615_v31 = vmul.f32 %v5659_v29, %v2607_v22 }
 0x60e   : > { %v2623_v33 = vmul.f32 %v5079_v30, %v2615_v31 }
 0x610   : > { %v6399_v34 = vadd.f32 %v5080_v32, %v2623_v33 }
 0x612   : > { %5389 = vmatmul.mubr.msk.f32.vlgmr.msra.gmra.mxu0 %vm710_vm1, %v6399_v34  ;;  %5394 = vmatmul.mubr.msk.f32.vlgmr.msra.gmra.mxu1 %vm710_vm1, %v6399_v34 }
 0x613   : > { %5397 = vmatpush3.xpose.msk.msra.mxu0 %vm710_vm1, %v2634_v35  ;;  %5402 = vmatpush3.xpose.msk.msra.mxu1 %vm710_vm1, %v2635_v36 }
 0x614   : > { %5398 = vmatprep.mubr.msk.f32.mxu0 %vm5925_vm0, %v5924_v0  ;;  %5403 = vmatprep.mubr.msk.f32.mxu1 %vm5925_vm0, %v5924_v0 }
 0x615   : > { %5406 = vmatprep.subr.mxu0 %v5924_v0  ;;  %5411 = vmatprep.subr.mxu1 %v5924_v0 }
 0x616   : > { %5399 = vmatmul.mubr.msk.f32.vlgmr.msra.gmra.mxu0 %vm710_vm1, %v6399_v34  ;;  %5404 = vmatmul.mubr.msk.f32.vlgmr.msra.gmra.mxu1 %vm710_vm1, %v6399_v34 }
 0x617   : > { %5407 = vmatpush3.xpose.msk.msra.mxu0 %vm710_vm1, %v2637_v37  ;;  %5412 = vmatpush3.xpose.msk.msra.mxu1 %vm710_vm1, %v2638_v38 }
 0x618   : > { %5408 = vmatprep.mubr.msk.f32.mxu0 %vm5925_vm0, %v5924_v0  ;;  %5413 = vmatprep.mubr.msk.f32.mxu1 %vm5925_vm0, %v5924_v0 }
 0x619   : > { %5416 = vmatprep.subr.mxu0 %v5924_v0  ;;  %5421 = vmatprep.subr.mxu1 %v5924_v0 }
 0x61a   : > { %5409 = vmatmul.mubr.msk.f32.vlgmr.msra.gmra.mxu0 %vm710_vm1, %v657_v39  ;;  %5414 = vmatmul.mubr.msk.f32.vlgmr.msra.gmra.mxu1 %vm710_vm1, %v657_v39 }
 0x61b   : > { %5417 = vmatpush3.xpose.msk.msra.mxu0 %vm710_vm1, %v2639_v40  ;;  %5422 = vmatpush3.xpose.msk.msra.mxu1 %vm710_vm1, %v2640_v41 }
 0x61c   : > { %5418 = vmatprep.mubr.msk.f32.mxu0 %vm5925_vm0, %v5924_v0  ;;  %5423 = vmatprep.mubr.msk.f32.mxu1 %vm5925_vm0, %v5924_v0 }
 0x61d   : > { %5426 = vmatprep.subr.mxu0 %v5924_v0  ;;  %5431 = vmatprep.subr.mxu1 %v5924_v0 }
 0x61e   : > { %5419 = vmatmul.mubr.msk.f32.vlgmr.msra.gmra.mxu0 %vm710_vm1, %v657_v39  ;;  %5424 = vmatmul.mubr.msk.f32.vlgmr.msra.gmra.mxu1 %vm710_vm1, %v657_v39 }
 0x61f   : > { %5428 = vmatprep.mubr.msk.f32.mxu0 %vm5925_vm0, %v5924_v0  ;;  %5433 = vmatprep.mubr.msk.f32.mxu1 %vm5925_vm0, %v5924_v0 }
 0x620   : > { %5427 = vmatpush3.xpose.msk.msra.mxu0 %vm710_vm1, %v2642_v42  ;;  %5432 = vmatpush3.xpose.msk.msra.mxu1 %vm710_vm1, %v2643_v43 }
 0x621   : > { %5436 = vmatprep.subr.mxu0 %v5924_v0  ;;  %5441 = vmatprep.subr.mxu1 %v5924_v0 }
 0x623   : > { %5429 = vmatmul.mubr.msk.f32.vlgmr.msra.gmra.mxu0 %vm710_vm1, %v657_v39  ;;  %5434 = vmatmul.mubr.msk.f32.vlgmr.msra.gmra.mxu1 %vm710_vm1, %v657_v39 }
 0x624   : > { %5437 = vmatpush3.xpose.msk.msra.mxu0 %vm710_vm1, %v2644_v44  ;;  %5442 = vmatpush3.xpose.msk.msra.mxu1 %vm710_vm1, %v2645_v45 }
 0x625   : > { %5438 = vmatprep.mubr.msk.f32.mxu0 %vm5925_vm0, %v5924_v0  ;;  %5443 = vmatprep.mubr.msk.f32.mxu1 %vm5925_vm0, %v5924_v0 }
 0x626   : > { %5446 = vmatprep.subr.mxu0 %v5924_v0  ;;  %5451 = vmatprep.subr.mxu1 %v5924_v0 }
 0x627   : > { %5439 = vmatmul.mubr.msk.f32.vlgmr.msra.gmra.mxu0 %vm710_vm1, %v657_v39  ;;  %5444 = vmatmul.mubr.msk.f32.vlgmr.msra.gmra.mxu1 %vm710_vm1, %v657_v39 }
 0x628   : > { %5448 = vmatprep.mubr.msk.f32.mxu0 %vm5925_vm0, %v5924_v0  ;;  %5453 = vmatprep.mubr.msk.f32.mxu1 %vm5925_vm0, %v5924_v0 }
 0x6d2   : > { %v2756_v46 = vpop.f32.mrf.mxu0  ;;  %v2829_v47 = vpop.f32.mrf.mxu1 }
 0x6d3   : > { %v2757_v4 = vadd.f32 %v5089_v58, %v2756_v46  ;;  %v2830_v5 = vadd.f32 %v5090_v59, %v2829_v47 }
 0x6d4   : > { %v5390_v48 = vpop.f32.mrf.mxu0  ;;  %v5395_v49 = vpop.f32.mrf.mxu1 }
 0x6d6   : > { %v2902_v51 = vpop.f32.mrf.mxu0  ;;  %v2975_v50 = vpop.f32.mrf.mxu1 }
 0x6d7   : > { %v2903_v14 = vadd.f32 %v5091_v8, %v2902_v51  ;;  %v2976_v15 = vadd.f32 %v5092_v9, %v2975_v50 }
 0x6d8   : > { %v5400_v52 = vpop.f32.mrf.mxu0  ;;  %v5405_v53 = vpop.f32.mrf.mxu1 }
 0x6da   : > { %v3075_v56 = vpop.f32.mrf.mxu0  ;;  %v3148_v57 = vpop.f32.mrf.mxu1 }
 0x6db   : > { %v3076_v60 = vadd.f32 %v5101_v54, %v3075_v56  ;;  %v3149_v61 = vadd.f32 %v5102_v55, %v3148_v57 }
 0x6dc   : > { %v5410_v62 = vpop.f32.mrf.mxu0  ;;  %v5415_v63 = vpop.f32.mrf.mxu1 }
 0x6dd   : > { %5447 = vmatpush3.xpose.msk.msra.mxu0 %vm1638_vm2, %v3076_v60  ;;  %5452 = vmatpush3.xpose.msk.msra.mxu1 %vm1638_vm2, %v3149_v61 }
 0x6de   : > { %v3221_v6 = vpop.f32.mrf.mxu0  ;;  %v3294_v7 = vpop.f32.mrf.mxu1  ;;  %5456 = vmatprep.subr.mxu0 %v5924_v0  ;;  %5461 = vmatprep.subr.mxu1 %v5924_v0 }
 0x6df   : > { %v3222_v10 = vadd.f32 %v5103_v1, %v3221_v6  ;;  %v3295_v11 = vadd.f32 %v5104_v2, %v3294_v7  ;;  %v5116_v1 = vld [vmem:[%s6679_s7 + $0xb] ss:$0 sm:$0xff] }
 0x6e0   : > { %v5420_v12 = vpop.f32.mrf.mxu0  ;;  %v5425_v13 = vpop.f32.mrf.mxu1  ;;  %5449 = vmatmul.mubr.msk.f32.vlgmr.msra.gmra.mxu0 %vm1638_vm2, %v2757_v4  ;;  %5454 = vmatmul.mubr.msk.f32.vlgmr.msra.gmra.mxu1 %vm1638_vm2, %v2830_v5  ;;  %v5115_v4 = vld [vmem:[%s6679_s7 + $0xa] ss:$0 sm:$0xff] }
 0x6e1   : > { %5457 = vmatpush3.xpose.msk.msra.mxu0 %vm1638_vm2, %v3222_v10  ;;  %5462 = vmatpush3.xpose.msk.msra.mxu1 %vm1638_vm2, %v3295_v11 }
 0x6e2   : > { %5458 = vmatprep.mubr.msk.f32.mxu0 %vm5925_vm0, %v5924_v0  ;;  %5463 = vmatprep.mubr.msk.f32.mxu1 %vm5925_vm0, %v5924_v0 }
 0x6e3   : > { %5466 = vmatprep.subr.mxu0 %v5924_v0  ;;  %5471 = vmatprep.subr.mxu1 %v5924_v0  ;;  %v3391_v18 = vpop.f32.mrf.mxu0  ;;  %v3464_v20 = vpop.f32.mrf.mxu1 }
 0x6e4   : > { %5459 = vmatmul.mubr.msk.f32.vlgmr.msra.gmra.mxu0 %vm1638_vm2, %v2903_v14  ;;  %5464 = vmatmul.mubr.msk.f32.vlgmr.msra.gmra.mxu1 %vm1638_vm2, %v2976_v15  ;;  %v3392_v19 = vadd.f32 %v5113_v16, %v3391_v18  ;;  %v3465_v21 = vadd.f32 %v5114_v17, %v3464_v20  ;;  %v4254_v16 = vld [vmem:[#allocation5] sm:$0xff] }
 0x6e5   : > { %5468 = vmatprep.mubr.msk.f32.mxu0 %vm5925_vm0, %v5924_v0  ;;  %5473 = vmatprep.mubr.msk.f32.mxu1 %vm5925_vm0, %v5924_v0  ;;  %v5430_v22 = vpop.f32.mrf.mxu0  ;;  %v5435_v23 = vpop.f32.mrf.mxu1 }
 0x6e6   : > { %5467 = vmatpush3.msra.mxu0 %v3392_v19  ;;  %5472 = vmatpush3.msra.mxu1 %v3465_v21  ;;  %v4255_v23 = vld [vmem:[#allocation5 + $0x8] sm:$0xff] }
 0x6e7   : > { %v6515_v24 = vpop.f32.mrf.mxu0  ;;  %5476 = vmatprep.subr.mxu0 %v5924_v0  ;;  %v3610_v25 = vpop.f32.mrf.mxu1  ;;  %5481 = vmatprep.subr.mxu1 %v5924_v0 }
 0x6e8   : > { %v3611_v7 = vadd.f32 %v5116_v1, %v3610_v25  ;;  %v3538_v9 = vadd.f32 %v5115_v4, %v6515_v24  ;;  %v4257_v24 = vld [vmem:[#allocation5 + $0x18] sm:$0xff]  ;;  %v4605_v1 = vld [vmem:[%s6686_s14 + $0x20] sm:$0xff] }
 0x6e9   : > { %v5440_v26 = vpop.f32.mrf.mxu0  ;;  %v5445_v3 = vpop.f32.mrf.mxu1 }
 0x6ea   : > { %v4256_v26 = vld [vmem:[#allocation5 + $0x10] sm:$0xff] }
 0x7a0   : > { %v3686_v27 = vpop.f32.mrf.mxu0  ;;  %v3762_v28 = vpop.f32.mrf.mxu1 }
 0x7a1   : > { %v3921_v29 = vsel %vm1638_vm2, %v3762_v28, -inf  ;;  %v3918_v30 = vsel %vm1638_vm2, %v3686_v27, -inf }
 0x7a2   : > { %3922 = vmax.xlane.f32.xlu1 %v3921_v29  ;;  %v5455_v31 = vpop.f32.mrf.mxu1  ;;  %3919 = vmax.xlane.f32.xlu0 %v3918_v30  ;;  %v5450_v32 = vpop.f32.mrf.mxu0 }
 0x7a4   : > { %v3838_v33 = vpop.f32.mrf.mxu0  ;;  %v3914_v35 = vpop.f32.mrf.mxu1 }
 0x7a5   : > { %v3927_v36 = vsel %vm1638_vm2, %v3914_v35, -inf  ;;  %v3924_v37 = vsel %vm1638_vm2, %v3838_v33, -inf }
 0x7a6   : > { %3928 = vmax.xlane.f32.xlu1 %v3927_v36  ;;  %v5465_v38 = vpop.f32.mrf.mxu1  ;;  %3925 = vmax.xlane.f32.xlu0 %v3924_v37  ;;  %v5460_v39 = vpop.f32.mrf.mxu0 }
 0x82b   : > { %v3923_v40 = vpop.xlane.xlu1 %3922  ;;  %v3920_v41 = vpop.xlane.xlu0 %3919 }
 0x82c   : > { %v3931_v42 = vsub.f32 %v3762_v28, %v3923_v40  ;;  %v3930_v43 = vsub.f32 %v3686_v27, %v3920_v41 }
 0x82e   : > { %v3936_v44 = vmul.f32 1.442695, %v3931_v42  ;;  %v3934_v45 = vmul.f32 1.442695, %v3930_v43 }
 0x82f   : > { %v3929_v46 = vpop.xlane.xlu1 %3928  ;;  %v3926_v47 = vpop.xlane.xlu0 %3925 }
 0x830   : > { %5660 = vpow2.f32 %v3936_v44  ;;  %v3933_v48 = vsub.f32 %v3914_v35, %v3929_v46  ;;  %v3932_v49 = vsub.f32 %v3838_v33, %v3926_v47 }
 0x831   : > { %5662 = vpow2.f32 %v3934_v45 }
 0x832   : > { %v3940_v51 = vmul.f32 1.442695, %v3933_v48  ;;  %v3938_v50 = vmul.f32 1.442695, %v3932_v49  ;;  %v5141_v48 = vld [vmem:[%s6681_s9] ss:$0 sm:$0xff] }
 0x834   : > { %5664 = vpow2.f32 %v3940_v51 }
 0x835   : > { %5666 = vpow2.f32 %v3938_v50 }
 0x83d   : > { %v5661_v52 = vpop.eup %5660 }
 0x83e   : > { %v5663_v53 = vpop.eup %5662  ;;  %v3945_v54 = vsel %vm1638_vm2, %v5661_v52, 0.0 }
 0x83f   : > { %3946 = vadd.xlane.f32.xlu1 %v3945_v54  ;;  %v3942_v55 = vsel %vm1638_vm2, %v5663_v53, 0.0 }
 0x840   : > { %3943 = vadd.xlane.f32.xlu0 %v3942_v55 }
 0x841   : > { %v5665_v56 = vpop.eup %5664 }
 0x842   : > { %v5667_v57 = vpop.eup %5666  ;;  %v3951_v58 = vsel %vm1638_vm2, %v5665_v56, 0.0 }
 0x843   : > { %3952 = vadd.xlane.f32.xlu1 %v3951_v58  ;;  %v3948_v59 = vsel %vm1638_vm2, %v5667_v57, 0.0  ;;  %v4600_v58 = vld [vmem:[#allocation8 + $0x18] sm:$0xff] }
 0x844   : > { %3949 = vadd.xlane.f32.xlu0 %v3948_v59  ;;  %v4599_v59 = vld [vmem:[#allocation8 + $0x10] sm:$0xff] }
 0x8c8   : > { %v3947_v60 = vpop.xlane.xlu1 %3946 }
 0x8c9   : > { %5668 = vrcp.f32 %v3947_v60  ;;  %v3944_v61 = vpop.xlane.xlu0 %3943  ;;  %v4598_v60 = vld [vmem:[#allocation8 + $0x8] sm:$0xff] }
 0x8ca   : > { %5670 = vrcp.f32 %v3944_v61  ;;  %v4608_v61 = vld [vmem:[%s6686_s14 + $0x38] sm:$0xff] }
 0x8cc   : > { %v3953_v62 = vpop.xlane.xlu1 %3952 }
 0x8cd   : > { %5672 = vrcp.f32 %v3953_v62  ;;  %v3950_v63 = vpop.xlane.xlu0 %3949  ;;  %v4607_v62 = vld [vmem:[%s6686_s14 + $0x30] sm:$0xff] }
 0x8ce   : > { %5674 = vrcp.f32 %v3950_v63  ;;  %v4606_v63 = vld [vmem:[%s6686_s14 + $0x28] sm:$0xff] }
 0x8d6   : > { %v5669_v2 = vpop.eup %5668 }
 0x8d7   : > { %v5671_v5 = vpop.eup %5670  ;;  %v3959_v6 = vmul.f32 %v5669_v2, %v5661_v52  ;;  %v4604_v2 = vld [vmem:[%s6686_s14 + $0x18] sm:$0xff] }
 0x8d8   : > { %v3958_v8 = vmul.f32 %v5671_v5, %v5663_v53 }
 0x8d9   : > { %5474 = vmatmul.mubr.msk.f32.vlgmr.msra.gmra.mxu1 %vm1638_vm2, %v3959_v6  ;;  %v4805_v12 = vsel %vm1638_vm2, %v3959_v6, 0.0 }
 0x8da   : > { %v5673_v10 = vpop.eup %5672  ;;  %5469 = vmatmul.mubr.msk.f32.vlgmr.msra.gmra.mxu0 %vm1638_vm2, %v3958_v8  ;;  %v4804_v11 = vsel %vm1638_vm2, %v3958_v8, 0.0  ;;  %5482 = vmatpush3.msra.mxu1 %v3611_v7  ;;  %v5143_v8 = vld [vmem:[%s6682_s10 + $0x1] ss:$0 sm:$0xff] }
 0x8db   : > { %v5675_v13 = vpop.eup %5674  ;;  %5477 = vmatpush3.msra.mxu0 %v3538_v9  ;;  %5478 = vmatprep.mubr.msk.f32.mxu0 %vm5925_vm0, %v5924_v0  ;;  %v3961_v14 = vmul.f32 %v5673_v10, %v5665_v56  ;;  %v4806_v17 = vadd.f32 %v4805_v12, %v4804_v11  ;;  %v5144_v10 = vld [vmem:[#allocation7 + $0x1] ss:$0 sm:$0xff] }
 0x8dc   : > { %5483 = vmatprep.mubr.msk.f32.mxu1 %vm5925_vm0, %v5924_v0  ;;  %v3960_v15 = vmul.f32 %v5675_v13, %v5667_v57  ;;  %5486 = vmatprep.subr.mxu0 %v5924_v0  ;;  %v4603_v13 = vld [vmem:[%s6686_s14 + $0x10] sm:$0xff] }
 0x8dd   : > { %5484 = vmatmul.mubr.msk.f32.vlgmr.msra.gmra.mxu1 %vm1638_vm2, %v3961_v14  ;;  %5491 = vmatprep.subr.mxu1 %v5924_v0  ;;  %v4809_v20 = vsel %vm1638_vm2, %v3961_v14, 0.0  ;;  %v4602_v14 = vld [vmem:[%s6686_s14 + $0x8] sm:$0xff] }
 0x8de   : > { %5479 = vmatmul.mubr.msk.f32.vlgmr.msra.gmra.mxu0 %vm1638_vm2, %v3960_v15  ;;  %v4807_v18 = vsel %vm1638_vm2, %v3960_v15, 0.0  ;;  %5493 = vmatprep.mubr.msk.f32.mxu1 %vm5925_vm0, %v5924_v0  ;;  %v4601_v15 = vld [vmem:[%s6686_s14] sm:$0xff] }
 0x8df   : > { %v4808_v19 = vadd.f32 %v4807_v18, %v4806_v17  ;;  %5487 = vmatpush3.msra.mxu0 %v4254_v16  ;;  %5488 = vmatprep.mubr.msk.f32.mxu0 %vm5925_vm0, %v5924_v0  ;;  %v5145_v16 = vld [vmem:[#allocation10] ss:$0 sm:$0xff] }
 0x8e0   : > { %5496 = vmatprep.subr.mxu0 %v5924_v0  ;;  %5492 = vmatpush3.msra.mxu1 %v4255_v23 }
 0x8e1   : > { %v4810_v21 = vadd.f32 %v4809_v20, %v4808_v19  ;;  %5501 = vmatprep.subr.mxu1 %v5924_v0 }
 0x8e3   : > { %v4812_v22 = vmul.f32 0.25, %v4810_v21  ;;  %v5147_v21 = vld [vmem:[#allocation11] ss:$0 sm:$0xff] }
 0x8e5   : > { %4813 = vst.msk [vmem:[%s643_s27] sm:$0xff] %vm1638_vm2, %v4812_v22 }
 0x999   : > { %v4104_v25 = vpop.f32.mrf.mxu1 }
 0x99a   : > { %v4031_v3 = vpop.f32.mrf.mxu0  ;;  %5494 = vmatmul.mubr.msk.f32.vlgmr.msra.gmra.mxu1 %vm1638_vm2, %v4104_v25 }
 0x99b   : > { %5489 = vmatmul.mubr.msk.f32.vlgmr.msra.gmra.mxu0 %vm1638_vm2, %v4031_v3  ;;  %v5475_v27 = vpop.f32.mrf.mxu1  ;;  %5502 = vmatpush3.msra.mxu1 %v4257_v24 }
 0x99c   : > { %v5470_v28 = vpop.f32.mrf.mxu0  ;;  %5497 = vmatpush3.msra.mxu0 %v4256_v26  ;;  %5498 = vmatprep.mubr.msk.f32.mxu0 %vm5925_vm0, %v5924_v0 }
 0x99d   : > { %v4250_v29 = vpop.f32.mrf.mxu1  ;;  %5503 = vmatprep.mubr.msk.f32.mxu1 %vm5925_vm0, %v5924_v0  ;;  %5506 = vmatprep.subr.mxu0 %v5924_v0 }
 0x99e   : > { %v4177_v30 = vpop.f32.mrf.mxu0  ;;  %5504 = vmatmul.mubr.msk.f32.vlgmr.msra.gmra.mxu1 %vm1638_vm2, %v4250_v29  ;;  %5517 = vmatprep.subr.mxu1 %v5924_v0 }
 0x99f   : > { %5499 = vmatmul.mubr.msk.f32.vlgmr.msra.gmra.mxu0 %vm1638_vm2, %v4177_v30  ;;  %v5485_v31 = vpop.f32.mrf.mxu1  ;;  %5533 = vmatprep.mubr.msk.f32.mxu1 %vm5925_vm0, %v5924_v0 }
 0x9a0   : > { %v5480_v32 = vpop.f32.mrf.mxu0  ;;  %5514 = vmatprep.mubr.msk.f32.mxu0 %vm5925_vm0, %v5924_v0  ;;  %5507 = vmatpush3.msra.mxu0 %v4600_v58 }
 0x9a1   : > { %5508 = vmatprep.subr.mxu0 %v5924_v0  ;;  %5518 = vmatpush3.msra.mxu1 %v4608_v61 }
 0x9a2   : > { %5509 = vmatpush3.msra.mxu0 %v4599_v59  ;;  %5519 = vmatprep.subr.mxu1 %v5924_v0 }
 0x9a3   : > { %5510 = vmatprep.subr.mxu0 %v5924_v0  ;;  %5520 = vmatpush3.msra.mxu1 %v4607_v62 }
 0x9a4   : > { %5511 = vmatpush3.msra.mxu0 %v4598_v60  ;;  %5521 = vmatprep.subr.mxu1 %v5924_v0 }
 0x9a5   : > { %5512 = vmatprep.subr.mxu0 %v5924_v0  ;;  %5522 = vmatpush3.msra.mxu1 %v4606_v63 }
 0x9a6   : > { %5523 = vmatprep.subr.mxu1 %v5924_v0 }
 0x9a7   : > { %5524 = vmatpush3.msra.mxu1 %v4605_v1 }
 0x9a8   : > { %5525 = vmatprep.subr.mxu1 %v5924_v0 }
 0x9a9   : > { %5526 = vmatpush3.msra.mxu1 %v4604_v2 }
 0x9aa   : > { %5527 = vmatprep.subr.mxu1 %v5924_v0 }
 0x9ab   : > { %5528 = vmatpush3.msra.mxu1 %v4603_v13 }
 0x9ac   : > { %5529 = vmatprep.subr.mxu1 %v5924_v0 }
 0x9ad   : > { %5530 = vmatpush3.msra.mxu1 %v4602_v14 }
 0x9ae   : > { %5531 = vmatprep.subr.mxu1 %v5924_v0 }
 0x9af   : > { %5532 = vmatpush3.msra.mxu1 %v4601_v15 }
 0xa5a   : > { %v4400_v33 = vpop.f32.mrf.mxu1 }
 0xa5b   : > { %v4327_v35 = vpop.f32.mrf.mxu0  ;;  %v4551_v37 = vsel %vm710_vm1, %v4400_v33, 0.0 }
 0xa5c   : > { %v4550_v36 = vsel %vm710_vm1, %v4327_v35, 0.0  ;;  %v5495_v38 = vpop.f32.mrf.mxu1 }
 0xa5d   : > { %v5490_v39 = vpop.f32.mrf.mxu0  ;;  %v4552_v41 = vadd.f32 %v4551_v37, %v4550_v36 }
 0xa5e   : > { %v4546_v40 = vpop.f32.mrf.mxu1 }
 0xa5f   : > { %v4473_v42 = vpop.f32.mrf.mxu0  ;;  %v4555_v47 = vsel %vm710_vm1, %v4546_v40, 0.0 }
 0xa60   : > { %v4553_v43 = vsel %vm710_vm1, %v4473_v42, 0.0  ;;  %v5505_v44 = vpop.f32.mrf.mxu1 }
 0xa61   : > { %v4554_v45 = vadd.f32 %v4553_v43, %v4552_v41  ;;  %v5500_v46 = vpop.f32.mrf.mxu0 }
 0xa63   : > { %v4556_v49 = vadd.f32 %v4555_v47, %v4554_v45 }
 0xa65   : > { %v4564_v51 = vadd.f32 %v5141_v48, %v4556_v49 }
 0xa67   : > { %v4565_v50 = vadd.f32 %v4564_v51, %v6399_v34  ;;  %v4597_v34 = vld [vmem:[#allocation8] sm:$0xff] }
 0xa68   : > { %5513 = vmatpush3.msra.mxu0 %v4597_v34 }
 0xa69   : > { %v4566_v52 = vsel %vm710_vm1, %v4565_v50, 0.0 }
 0xa6a   : > { %4567 = vadd.xlane.f32.xlu0 %v4566_v52 }
 0xaf3   : > { %v4568_v53 = vpop.xlane.xlu0 %4567 }
 0xaf4   : > { %v4569_v54 = vmul.f32 0.03125, %v4568_v53 }
 0xaf6   : > { %v4570_v55 = vsub.f32 %v4565_v50, %v4569_v54 }
 0xaf8   : > { %v4571_v56 = vmul.f32 %v4570_v55, %v4570_v55 }
 0xafa   : > { %v4572_v57 = vsel %vm710_vm1, %v4571_v56, 0.0 }
 0xafb   : > { %4573 = vadd.xlane.f32.xlu1 %v4572_v57 }
 0xb84   : > { %v4574_v4 = vpop.xlane.xlu1 %4573 }
 0xb85   : > { %v4575_v5 = vmul.f32 0.03125, %v4574_v4 }
 0xb87   : > { %v4576_v6 = vadd.f32 1e-05, %v4575_v5 }
 0xb89   : > { %5676 = vrsqrt.f32 %v4576_v6 }
 0xb96   : > { %v5677_v7 = vpop.eup %5676 }
 0xb97   : > { %v4578_v9 = vmul.f32 %v5677_v7, %v4570_v55 }
 0xb99   : > { %v4587_v11 = vmul.f32 %v5143_v8, %v4578_v9 }
 0xb9b   : > { %v4596_v12 = vadd.f32 %v5144_v10, %v4587_v11 }
 0xb9d   : > { %5515 = vmatmul.mubr.msk.f32.vlgmr.msra.gmra.mxu0 %vm710_vm1, %v4596_v12 }
 0xc5d   : > { %v4685_v17 = vpop.f32.mrf.mxu0 }
 0xc5e   : > { %v4686_v18 = vadd.f32 %v5145_v16, %v4685_v17 }
 0xc5f   : > { %v5516_v19 = vpop.f32.mrf.mxu0 }
 0xc60   : > { %v4689_v20 = vmax.f32 %v4686_v18, 0.0 }
 0xc62   : > { %5534 = vmatmul.mubr.msk.f32.vlgmr.msra.gmra.mxu1 %vm4697_vm4, %v4689_v20 }
 0xd22   : > { %v4767_v22 = vpop.f32.mrf.mxu1 }
 0xd23   : > { %v4768_v23 = vadd.f32 %v5147_v21, %v4767_v22 }
 0xd24   : > { %v5535_v24 = vpop.f32.mrf.mxu1 }
 0xd25   : > { %v4771_v25 = vadd.f32 %v4768_v23, %v4596_v12 }
 0xd27   : > { %v4772_v26 = vsel %vm710_vm1, %v4771_v25, 0.0 }
 0xd28   : > { %4773 = vadd.xlane.f32.xlu0 %v4772_v26 }
 0xdb1   : > { %v4774_v0 = vpop.xlane.xlu0 %4773 }
 0xdb2   : > { %v4775_v3 = vmul.f32 0.03125, %v4774_v0 }
 0xdb4   : > { %v4776_v27 = vsub.f32 %v4771_v25, %v4775_v3 }
 0xdb6   : > { %v4777_v28 = vmul.f32 %v4776_v27, %v4776_v27 }
 0xdb8   : > { %v4778_v29 = vsel %vm710_vm1, %v4777_v28, 0.0 }
 0xdb9   : > { %4779 = vadd.xlane.f32.xlu1 %v4778_v29 }
 0xdba   : > { %5849 = shalt.err (!%p5846_p11)
}
 0xdbb   : > { %s5850_s28 = scalar_lea.hbm %s4833_s6, 128  ;;  %s5854_s27 = scalar_lea.hbm %s6689_s17, 256 }
 0xdbc   : > { %p5851_p5 = scmp.ne.s32.totalorder %s4833_s6, %s5850_s28  ;;  %p5855_p0 = scmp.lt.s32.totalorder %s4833_s6, %s6689_s17 }
 0xdbd   : > { %p5856_p1 = scmp.lt.s32.totalorder %s5854_s27, %s5850_s28 }
 0xdbe   : > { %p5852_p6 = pnand %p5851_p5, %p6728_p10 }
 0xdbf   : > { %p5857_p3 = por %p5856_p1, %p5855_p0 }
 0xdc0   : > { %p5853_p12 = pneg %p5852_p6 }
 0xdc2   : > { %p5858_p2 = pnand %p5857_p3, %p5853_p12 }
 0xdc4   : > { %5861 = shalt.err (!%p5858_p2)
}
 0xdc5   : > { %5560 = dma.vmem_to_hbm [thread:$0]  (%p6728_p10), %s4836_s18, 128, %s4833_s6, %s4819_s21   ;;  %v5150_v35 = vld [vmem:[%s6682_s10 + $0x2] ss:$0 sm:$0xff] }
 0xdc6   : > { %v5151_v37 = vld [vmem:[#allocation7 + $0x2] ss:$0 sm:$0xff]  ;;  %s6729_s19 = sld [smem:[#allocation29_spill]] }
 0xdcc   : > { %s655_s23 = scalar_lea.vmem %s6729_s19, %s6152_s0 }
 0xe42   : > { %v4780_v30 = vpop.xlane.xlu1 %4779 }
 0xe43   : > { %v4781_v31 = vmul.f32 0.03125, %v4780_v30 }
 0xe45   : > { %v4782_v32 = vadd.f32 1e-05, %v4781_v31 }
 0xe47   : > { %5678 = vrsqrt.f32 %v4782_v32 }
 0xe54   : > { %v5679_v33 = vpop.eup %5678 }
 0xe55   : > { %v4784_v36 = vmul.f32 %v5679_v33, %v4776_v27 }
 0xe57   : > { %v4793_v38 = vmul.f32 %v5150_v35, %v4784_v36 }
 0xe59   : > { %v4802_v39 = vadd.f32 %v5151_v37, %v4793_v38 }
 0xe5b   : > { %4803 = vst.msk [vmem:[%s655_s23] sm:$0xff] %vm710_vm1, %v4802_v39 }
 0xe5c PF: > { %s6730_s1 = sld [smem:[#allocation21_spill]] }
 0xe5d   : > { %s6731_s18 = sld [smem:[#allocation19_spill]] }
 0xe5e   : > { %s6732_s6 = sld [smem:[#allocation24_spill]] }
 0xe62   : > { %p5597_p10 = scmp.ge.s32.totalorder %s6730_s1, 2 }
 0xe63   : > { %s4854_s21 = sand.u32 1, %s6731_s18  }
 0xe64   : > { %p6733_p4 = scmp.ne.s32.totalorder %s6732_s6, 0  ;;  %s4855_s28 = scalar_lea.sflag [#allocation4], %s4854_s21 }
 0xe66   : > { %p5582_p7 = pnand %p5597_p10, %p6733_p4 }
 0xe68   : > { %p5583_p8 = pneg %p5582_p7 }
 0xe6a   : > { %5895 = dma.done.wait (%p5583_p8), %s4855_s28, 128  }
 0xe6b   : > { %5897 = vsyncadd (%p5583_p8), %s4855_s28, 4294967168  ;;  %s6734_s27 = sld [smem:[#allocation22_spill]]  ;;  %s6737_s24 = smov %s5904_s25 }
 0xe6c   : > { %s6735_s20 = sld [smem:[#allocation20_spill]] }
 0xe6d   : > { %s6736_s26 = sld [smem:[#allocation23_spill]] }
 0xe71   : > { %p32_p9 = scmp.ge.s32.totalorder %s6734_s27, 4  }
 0xe72   : > { %s6738_s25 = smov %s6735_s20 }
 0xe73   :  { %34 = sbr.rel (!%p32_p9) target bundleno = 13 (0xd), region = 171 }
 0xe78   :  { %4860 = vsyncpa [#allocation3], 1 }
 0xe79   :  { %4862 = vsyncpa [#allocation3 + $0x1], 1 }
 0xe7a   :  { %4863 = vsyncpa [#allocation6], 1 }
 0xe7b   :  { %4864 = vsyncpa [#allocation9], 1 }
 0xe7c   :  { %4865 = vsyncpa [#allocation12], 1 }
 0xe7d   :  { %4866 = vsyncpa [#allocation4], 1 }
 0xe7e   :  { %4868 = vsyncpa [#allocation4 + $0x1], 1 }

</bundles_post_ra>
